<compile_context>
chip_gen: v7x
topology: tpu7x:2x2x1
jax: 0.10.0
libtpu: 0.0.40
codegen_flags: <defaults>
</compile_context>

<pallas_src>
import jax
import jax.numpy as jnp
import numpy as np
from jax.experimental import pallas as pl
from jax.experimental.pallas import tpu as pltpu


LANE = 128          # TPU lane width: channel dims padded to a multiple of this.
BF16_SUBLANE = 16   # bf16 sublane tile; L_tile / halo offsets kept multiples of this.


def _round_up(x, m):
    return (x + m - 1) // m * m


# ---------------------------------------------------------------------------
# Fused Pallas kernel: the whole TCN stack for one (batch, L-tile) grid step.
# ---------------------------------------------------------------------------
def _build_tcn_kernel(layer_meta, k, pad_align, cp, l_tile):
    """layer_meta: tuple of (dilation, has_downsample) per layer (static)."""

    def kernel(x_ref, w_ref, b_ref, o_ref, halo_ref, carry_ref):
        # x_ref   : (1, L_tile, Cp) bf16 input-activation tile
        # w_ref   : (n_w, k*Cp, Cp) bf16 packed conv / downsample weights
        # b_ref   : (n_w, 1, Cp)    f32  packed biases
        # o_ref   : (1, L_tile, Cp) bf16 output tile
        # halo_ref: (pad_align + L_tile, Cp) bf16 scratch (carry ++ activation)
        # carry_ref: (n_conv, pad_align, Cp) bf16 per-conv activation tails
        lt = pl.program_id(1)

        # Start of a new sequence (new batch element): the carries ARE the
        # causal zero boundary (Chomp1d == pad-left + chomp-right).
        @pl.when(lt == 0)
        def _():
            carry_ref[...] = jnp.zeros_like(carry_ref)

        def causal_conv(act_bf, widx, cidx, dilation):
            # act_bf: (L_tile, Cp) bf16 conv input for THIS layer/conv.
            if k > 1:
                # halo = [previous-tile tail of this conv's input | current tile]
                halo_ref[0:pad_align, :] = carry_ref[cidx]
                halo_ref[pad_align:pad_align + l_tile, :] = act_bf
                taps = []
                for j in range(k - 1):
                    s = (k - 1 - j) * dilation        # causal shift >= 1
                    taps.append(halo_ref[pad_align - s:pad_align - s + l_tile, :])
                taps.append(act_bf)                   # tap k-1, shift 0
                lhs = jnp.concatenate(taps, axis=-1)  # (L_tile, k*Cp)
                # Carry for the next L tile: last pad_align rows of carry++act.
                carry_ref[cidx] = halo_ref[l_tile:l_tile + pad_align, :]
                acc = jnp.dot(lhs, w_ref[widx],
                              preferred_element_type=jnp.float32)
            else:
                acc = jnp.dot(act_bf, w_ref[widx],
                              preferred_element_type=jnp.float32)
            return acc + b_ref[widx]                  # f32 bias add

        x_bf = x_ref[0]                               # (L_tile, Cp) bf16
        widx = 0                                      # packed weight index
        cidx = 0                                      # carry index (convs only)
        for dilation, has_down in layer_meta:         # static unrolled stack
            h_bf = jnp.maximum(causal_conv(x_bf, widx, cidx, dilation),
                               0.0).astype(jnp.bfloat16)
            widx += 1
            cidx += 1
            out2 = jnp.maximum(causal_conv(h_bf, widx, cidx, dilation), 0.0)
            widx += 1
            cidx += 1
            if has_down:                              # 1x1 residual projection
                wd = w_ref[widx][:cp, :]              # real rows live in [:Cp]
                res = jnp.dot(x_bf, wd,
                              preferred_element_type=jnp.float32) + b_ref[widx]
                widx += 1
            else:
                res = x_bf.astype(jnp.float32)        # identity residual
            # Block output carried to the next layer in bf16.
            x_bf = jnp.maximum(out2 + res, 0.0).astype(jnp.bfloat16)

        o_ref[0] = x_bf                               # lane-dense bf16 store

    return kernel


# ---------------------------------------------------------------------------
# Wrapper: lane/time pad, run one fused pallas_call over the (B, L-tile) grid.
# ---------------------------------------------------------------------------
def tcn_forward(x_ncl, packed, l_tile=256):
    """x_ncl: (B, C_in, L) f32 (PyTorch NCL) -> (B, C_out, L) f32."""
    W = packed["W"]
    Bv = packed["B"]
    layer_meta = packed["layer_meta"]
    k = packed["kernel_size"]
    cp = packed["cp"]
    pad_align = packed["pad_align"]
    c_out = packed["c_out"]
    n_conv = packed["n_conv"]

    B, c_in, L = x_ncl.shape
    l_tile = min(l_tile, _round_up(L, BF16_SUBLANE))
    assert l_tile % BF16_SUBLANE == 0
    Lp = _round_up(L, l_tile)
    num_lt = Lp // l_tile

    # NCL -> NLC, cast to bf16, lane-pad channels, pad time to a tile multiple.
    # (padded time rows only influence outputs at t >= L -- causal -- and are
    # sliced off below; padded channels are zero through the whole stack.)
    x = jnp.transpose(x_ncl, (0, 2, 1)).astype(jnp.bfloat16)
    x = jnp.pad(x, ((0, 0), (0, Lp - L), (0, cp - c_in)))

    kernel = _build_tcn_kernel(layer_meta, k, pad_align, cp, l_tile)

    in_specs = [
        pl.BlockSpec((1, l_tile, cp), lambda b, t: (b, t, 0)),   # activations
        pl.BlockSpec(W.shape, lambda b, t: (0, 0, 0)),           # all weights
        pl.BlockSpec(Bv.shape, lambda b, t: (0, 0, 0)),          # all biases
    ]
    out_specs = pl.BlockSpec((1, l_tile, cp), lambda b, t: (b, t, 0))

    out = pl.pallas_call(
        kernel,
        out_shape=jax.ShapeDtypeStruct((B, Lp, cp), jnp.bfloat16),
        grid_spec=pltpu.PrefetchScalarGridSpec(
            num_scalar_prefetch=0,
            grid=(B, num_lt),
            in_specs=in_specs,
            out_specs=out_specs,
            scratch_shapes=[
                pltpu.VMEM((pad_align + l_tile, cp), jnp.bfloat16),  # halo
                pltpu.VMEM((n_conv, pad_align, cp), jnp.bfloat16),   # carries
            ],
        ),
        compiler_params=pltpu.CompilerParams(
            # B split across cores; the L-tile axis carries sequential state.
            dimension_semantics=("parallel", "arbitrary"),
            # With L_tile=256 the per-step footprint is ~2-3 MiB; raise the
            # scoped cap for headroom (v5e default 16 MiB, v7x physical 64 MiB).
            vmem_limit_bytes=32 * 1024 * 1024,
        ),
    )(x, W, Bv)

    out = out[:, :L, :c_out].astype(jnp.float32)     # drop lane/time padding
    return jnp.transpose(out, (0, 2, 1))             # back to NCL


# ---------------------------------------------------------------------------
# Parameter construction (deterministic, emulating weight_norm'd Conv1d).
# ---------------------------------------------------------------------------
def make_wn_conv(key, cin, cout, k):
    kv, kb = jax.random.split(key)
    v = 0.01 * jax.random.normal(kv, (cout, cin, k), jnp.float32)   # weight_v
    vnorm = jnp.sqrt(jnp.sum(v * v, axis=(1, 2), keepdims=True))
    g = vnorm                                                        # weight_norm init
    w = g * v / vnorm                                                # (Cout, Cin, k)
    w_k = jnp.transpose(w, (2, 1, 0))                                # (k, Cin, Cout)
    b = 0.1 * jax.random.normal(kb, (cout,), jnp.float32).reshape(1, cout)
    return w_k, b


def make_tcn_params(key, num_inputs, num_channels, kernel_size):
    layers = []
    for i, cout in enumerate(num_channels):
        cin = num_inputs if i == 0 else num_channels[i - 1]
        key, k1, k2, k3 = jax.random.split(key, 4)
        w1, b1 = make_wn_conv(k1, cin, cout, kernel_size)
        w2, b2 = make_wn_conv(k2, cout, cout, kernel_size)
        layer = dict(w1=w1, b1=b1, w2=w2, b2=b2, dilation=2 ** i,
                     has_down=(cin != cout), cin=cin, cout=cout)
        if cin != cout:                       # downsample = 1x1 conv
            kd_w, kd_b = jax.random.split(k3)
            wd = 0.01 * jax.random.normal(kd_w, (cout, cin, 1), jnp.float32)
            layer["wd"] = jnp.transpose(wd, (2, 1, 0))[0]            # (Cin, Cout)
            layer["bd"] = 0.1 * jax.random.normal(kd_b, (1, cout), jnp.float32)
        layers.append(layer)
    return layers


def pack_params(layers, num_inputs, num_channels, kernel_size):
    """Lane-pad channels to 128, fuse the k taps into one (k*Cp, Cp) bf16 weight
    per conv, and concatenate all weights / biases into single packed arrays."""
    cp = _round_up(max([num_inputs] + list(num_channels)), LANE)
    max_pad = (kernel_size - 1) * max(l["dilation"] for l in layers)
    pad_align = max(_round_up(max_pad, BF16_SUBLANE), BF16_SUBLANE)
    kcp = kernel_size * cp

    def pad_conv_w(w):   # (k, cin_t, cout_t) f32 -> (k*cp, cp) bf16
        wp = jnp.zeros((kernel_size, cp, cp), jnp.float32)
        wp = wp.at[:, :w.shape[1], :w.shape[2]].set(w)
        return wp.reshape(kcp, cp).astype(jnp.bfloat16)

    def pad_down_w(wd):  # (cin_t, cout_t) f32 -> (k*cp, cp) bf16 (rows >= cp are zero)
        wp = jnp.zeros((kcp, cp), jnp.float32)
        wp = wp.at[:wd.shape[0], :wd.shape[1]].set(wd)
        return wp.astype(jnp.bfloat16)

    def pad_b(b):        # (1, cout_t) f32 -> (1, cp) f32
        return jnp.zeros((1, cp), jnp.float32).at[:, :b.shape[1]].set(b)

    w_list, b_list, layer_meta = [], [], []
    for l in layers:
        w_list += [pad_conv_w(l["w1"]), pad_conv_w(l["w2"])]
        b_list += [pad_b(l["b1"]), pad_b(l["b2"])]
        if l["has_down"]:
            w_list.append(pad_down_w(l["wd"]))
            b_list.append(pad_b(l["bd"]))
        layer_meta.append((l["dilation"], l["has_down"]))

    W = jnp.stack(w_list)                    # (n_w, k*cp, cp) bf16
    Bv = jnp.stack([b[None] if b.ndim == 1 else b for b in b_list])  # (n_w, 1, cp) f32

    return dict(W=W, B=Bv, layer_meta=tuple(layer_meta),
                kernel_size=kernel_size, cp=cp, pad_align=pad_align,
                c_out=num_channels[-1], n_conv=2 * len(layers))


# ---------------------------------------------------------------------------
# Pure-jnp reference (same math, same bf16/f32 pipeline) for correctness.
# ---------------------------------------------------------------------------
def _ref_causal_conv(x_bf, w, b, dilation):
    k, L = w.shape[0], x_bf.shape[1]
    pad = (k - 1) * dilation
    xp = jnp.pad(x_bf, ((0, 0), (pad, 0), (0, 0)))
    taps = [xp[:, j * dilation:j * dilation + L, :] for j in range(k)]
    lhs = jnp.concatenate(taps, axis=-1)                       # (B, L, k*Cin) bf16
    wk = w.reshape(k * w.shape[1], w.shape[2]).astype(jnp.bfloat16)
    return jnp.einsum("blc,cd->bld", lhs, wk,
                      preferred_element_type=jnp.float32) + b[None]


def _ref_net(x_ncl, layers):
    x = jnp.transpose(x_ncl, (0, 2, 1)).astype(jnp.bfloat16)
    for l in layers:
        d = l["dilation"]
        h = jnp.maximum(_ref_causal_conv(x, l["w1"], l["b1"], d),
                        0.0).astype(jnp.bfloat16)
        o = jnp.maximum(_ref_causal_conv(h, l["w2"], l["b2"], d), 0.0)
        if l["has_down"]:
            res = jnp.einsum("blc,cd->bld", x, l["wd"].astype(jnp.bfloat16),
                             preferred_element_type=jnp.float32) + l["bd"][None]
        else:
            res = x.astype(jnp.float32)
        x = jnp.maximum(o + res, 0.0).astype(jnp.bfloat16)
    return jnp.transpose(x.astype(jnp.float32), (0, 2, 1))


if __name__ == "__main__":
    key = jax.random.PRNGKey(0)
    k_x, k_p = jax.random.split(key)

    B, C_IN, L = 2, 4, 64
    NUM_CHANNELS = [8, 8, 16]
    KERNEL_SIZE = 2
    L_TILE = 16      # small demo tile so the cross-tile halo-carry path runs

    x = jax.random.normal(k_x, (B, C_IN, L), jnp.float32)   # NCL, like PyTorch
    layers = make_tcn_params(k_p, C_IN, NUM_CHANNELS, KERNEL_SIZE)
    packed = pack_params(layers, C_IN, NUM_CHANNELS, KERNEL_SIZE)

    out = tcn_forward(x, packed, l_tile=L_TILE)
    out = jax.block_until_ready(out)

    ref = _ref_net(x, layers)
    assert out.shape == (B, NUM_CHANNELS[-1], L)
    np.testing.assert_allclose(np.asarray(out), np.asarray(ref),
                               rtol=1e-2, atol=1e-2)

    print("KERNEL_OK")
</pallas_src>

<mosaic_0001>
module attributes {stable_mosaic.version = 11 : i64} {
  func.func @kernel(%arg0: i32, %arg1: i32, %arg2: memref<1x16x128xbf16, #tpu.memory_space<vmem>>, %arg3: memref<8x256x128xbf16, #tpu.memory_space<vmem>>, %arg4: memref<8x1x128xf32, #tpu.memory_space<vmem>>, %arg5: memref<1x16x128xbf16, #tpu.memory_space<vmem>>, %arg6: memref<32x128xbf16, #tpu.memory_space<vmem>>, %arg7: memref<6x16x128xbf16, #tpu.memory_space<vmem>>) attributes {dimension_semantics = [#tpu.dimension_semantics<parallel>, #tpu.dimension_semantics<arbitrary>], iteration_bounds = array<i64: 2, 4>, scalar_prefetch = 0 : i64, scratch_operands = 2 : i64, tpu.core_type = #tpu.core_type<tc>, window_params = [{transform_indices = @transform_0, window_bounds = array<i64: 1, 16, 128>}, {pipeline_mode = #tpu.pipeline_mode<synchronous>, transform_indices = @transform_1, window_bounds = array<i64: 8, 256, 128>}, {pipeline_mode = #tpu.pipeline_mode<synchronous>, transform_indices = @transform_2, window_bounds = array<i64: 8, 1, 128>}, {transform_indices = @transform_3, window_bounds = array<i64: 1, 16, 128>}]} {
    %c0_i32 = arith.constant 0 : i32
    %0 = arith.cmpi eq, %arg1, %c0_i32 : i32
    %1 = arith.extui %0 : i1 to i32
    %c0_i32_0 = arith.constant 0 : i32
    %2 = arith.cmpi ne, %1, %c0_i32_0 : i32
    scf.if %2 {
      %cst_143 = arith.constant 0.000000e+00 : bf16
      %154 = vector.broadcast %cst_143 : bf16 to vector<6x16x128xbf16>
      %c0_144 = arith.constant 0 : index
      %c0_145 = arith.constant 0 : index
      %c0_146 = arith.constant 0 : index
      %155 = vector.load %arg7[%c0_144, %c0_145, %c0_146] : memref<6x16x128xbf16, #tpu.memory_space<vmem>>, vector<6x16x128xbf16>
      tpu.vector_store %arg7[%c0_144, %c0_145, %c0_146], %154 {strides = array<i32>} : memref<6x16x128xbf16, #tpu.memory_space<vmem>>, vector<6x16x128xbf16>,
    } else {
    }
    %c0 = arith.constant 0 : index
    %c0_1 = arith.constant 0 : index
    %c0_2 = arith.constant 0 : index
    %3 = vector.load %arg2[%c0, %c0_1, %c0_2] : memref<1x16x128xbf16, #tpu.memory_space<vmem>>, vector<1x16x128xbf16>
    %4 = vector.shape_cast %3 : vector<1x16x128xbf16> to vector<16x128xbf16>
    %c0_3 = arith.constant 0 : index
    %c0_4 = arith.constant 0 : index
    %c0_5 = arith.constant 0 : index
    %5 = vector.load %arg7[%c0_3, %c0_4, %c0_5] : memref<6x16x128xbf16, #tpu.memory_space<vmem>>, vector<1x16x128xbf16>
    %6 = vector.shape_cast %5 : vector<1x16x128xbf16> to vector<16x128xbf16>
    %c0_6 = arith.constant 0 : index
    %c0_7 = arith.constant 0 : index
    %7 = vector.load %arg6[%c0_6, %c0_7] : memref<32x128xbf16, #tpu.memory_space<vmem>>, vector<16x128xbf16>
    tpu.vector_store %arg6[%c0_6, %c0_7], %6 {strides = array<i32>} : memref<32x128xbf16, #tpu.memory_space<vmem>>, vector<16x128xbf16>,
    %c16 = arith.constant 16 : index
    %c0_8 = arith.constant 0 : index
    %8 = vector.load %arg6[%c16, %c0_8] : memref<32x128xbf16, #tpu.memory_space<vmem>>, vector<16x128xbf16>
    tpu.vector_store %arg6[%c16, %c0_8], %4 {strides = array<i32>} : memref<32x128xbf16, #tpu.memory_space<vmem>>, vector<16x128xbf16>,
    %c15 = arith.constant 15 : index
    %c0_9 = arith.constant 0 : index
    %9 = vector.load %arg6[%c15, %c0_9] : memref<32x128xbf16, #tpu.memory_space<vmem>>, vector<16x128xbf16>
    %10 = tpu.concatenate %9, %4 in 1 : vector<16x128xbf16>, vector<16x128xbf16> -> vector<16x256xbf16>
    %c16_10 = arith.constant 16 : index
    %c0_11 = arith.constant 0 : index
    %11 = vector.load %arg6[%c16_10, %c0_11] : memref<32x128xbf16, #tpu.memory_space<vmem>>, vector<16x128xbf16>
    %c0_12 = arith.constant 0 : index
    %c0_13 = arith.constant 0 : index
    %c0_14 = arith.constant 0 : index
    %12 = vector.load %arg7[%c0_12, %c0_13, %c0_14] : memref<6x16x128xbf16, #tpu.memory_space<vmem>>, vector<1x16x128xbf16>
    %13 = vector.shape_cast %12 : vector<1x16x128xbf16> to vector<16x128xbf16>
    %14 = vector.shape_cast %11 : vector<16x128xbf16> to vector<1x16x128xbf16>
    tpu.vector_store %arg7[%c0_12, %c0_13, %c0_14], %14 {strides = array<i32>} : memref<6x16x128xbf16, #tpu.memory_space<vmem>>, vector<1x16x128xbf16>,
    %c0_15 = arith.constant 0 : index
    %c0_16 = arith.constant 0 : index
    %c0_17 = arith.constant 0 : index
    %15 = vector.load %arg3[%c0_15, %c0_16, %c0_17] : memref<8x256x128xbf16, #tpu.memory_space<vmem>>, vector<1x256x128xbf16>
    %16 = vector.shape_cast %15 : vector<1x256x128xbf16> to vector<256x128xbf16>
    %cst = arith.constant dense<0.000000e+00> : vector<16x128xf32>
    %17 = tpu.matmul %10, %16, %cst {dimension_numbers = #tpu.dot_dimension_numbers<[1], [0], [0], [1], [0, 0, 1, 1], [], []>} : vector<16x256xbf16>, vector<256x128xbf16>, vector<16x128xf32> -> vector<16x128xf32>
    %c0_18 = arith.constant 0 : index
    %c0_19 = arith.constant 0 : index
    %c0_20 = arith.constant 0 : index
    %18 = vector.load %arg4[%c0_18, %c0_19, %c0_20] : memref<8x1x128xf32, #tpu.memory_space<vmem>>, vector<1x1x128xf32>
    %19 = vector.shape_cast %18 : vector<1x1x128xf32> to vector<1x128xf32>
    %20 = vector.broadcast %19 : vector<1x128xf32> to vector<16x128xf32>
    %21 = arith.addf %17, %20 : vector<16x128xf32>
    %cst_21 = arith.constant 0.000000e+00 : f32
    %22 = vector.broadcast %cst_21 : f32 to vector<16x128xf32>
    %23 = arith.maximumf %21, %22 : vector<16x128xf32>
    %24 = arith.truncf %23 : vector<16x128xf32> to vector<16x128xbf16>
    %c1 = arith.constant 1 : index
    %c0_22 = arith.constant 0 : index
    %c0_23 = arith.constant 0 : index
    %25 = vector.load %arg7[%c1, %c0_22, %c0_23] : memref<6x16x128xbf16, #tpu.memory_space<vmem>>, vector<1x16x128xbf16>
    %26 = vector.shape_cast %25 : vector<1x16x128xbf16> to vector<16x128xbf16>
    %c0_24 = arith.constant 0 : index
    %c0_25 = arith.constant 0 : index
    %27 = vector.load %arg6[%c0_24, %c0_25] : memref<32x128xbf16, #tpu.memory_space<vmem>>, vector<16x128xbf16>
    tpu.vector_store %arg6[%c0_24, %c0_25], %26 {strides = array<i32>} : memref<32x128xbf16, #tpu.memory_space<vmem>>, vector<16x128xbf16>,
    %c16_26 = arith.constant 16 : index
    %c0_27 = arith.constant 0 : index
    %28 = vector.load %arg6[%c16_26, %c0_27] : memref<32x128xbf16, #tpu.memory_space<vmem>>, vector<16x128xbf16>
    tpu.vector_store %arg6[%c16_26, %c0_27], %24 {strides = array<i32>} : memref<32x128xbf16, #tpu.memory_space<vmem>>, vector<16x128xbf16>,
    %c15_28 = arith.constant 15 : index
    %c0_29 = arith.constant 0 : index
    %29 = vector.load %arg6[%c15_28, %c0_29] : memref<32x128xbf16, #tpu.memory_space<vmem>>, vector<16x128xbf16>
    %30 = tpu.concatenate %29, %24 in 1 : vector<16x128xbf16>, vector<16x128xbf16> -> vector<16x256xbf16>
    %c16_30 = arith.constant 16 : index
    %c0_31 = arith.constant 0 : index
    %31 = vector.load %arg6[%c16_30, %c0_31] : memref<32x128xbf16, #tpu.memory_space<vmem>>, vector<16x128xbf16>
    %c1_32 = arith.constant 1 : index
    %c0_33 = arith.constant 0 : index
    %c0_34 = arith.constant 0 : index
    %32 = vector.load %arg7[%c1_32, %c0_33, %c0_34] : memref<6x16x128xbf16, #tpu.memory_space<vmem>>, vector<1x16x128xbf16>
    %33 = vector.shape_cast %32 : vector<1x16x128xbf16> to vector<16x128xbf16>
    %34 = vector.shape_cast %31 : vector<16x128xbf16> to vector<1x16x128xbf16>
    tpu.vector_store %arg7[%c1_32, %c0_33, %c0_34], %34 {strides = array<i32>} : memref<6x16x128xbf16, #tpu.memory_space<vmem>>, vector<1x16x128xbf16>,
    %c1_35 = arith.constant 1 : index
    %c0_36 = arith.constant 0 : index
    %c0_37 = arith.constant 0 : index
    %35 = vector.load %arg3[%c1_35, %c0_36, %c0_37] : memref<8x256x128xbf16, #tpu.memory_space<vmem>>, vector<1x256x128xbf16>
    %36 = vector.shape_cast %35 : vector<1x256x128xbf16> to vector<256x128xbf16>
    %cst_38 = arith.constant dense<0.000000e+00> : vector<16x128xf32>
    %37 = tpu.matmul %30, %36, %cst_38 {dimension_numbers = #tpu.dot_dimension_numbers<[1], [0], [0], [1], [0, 0, 1, 1], [], []>} : vector<16x256xbf16>, vector<256x128xbf16>, vector<16x128xf32> -> vector<16x128xf32>
    %c1_39 = arith.constant 1 : index
    %c0_40 = arith.constant 0 : index
    %c0_41 = arith.constant 0 : index
    %38 = vector.load %arg4[%c1_39, %c0_40, %c0_41] : memref<8x1x128xf32, #tpu.memory_space<vmem>>, vector<1x1x128xf32>
    %39 = vector.shape_cast %38 : vector<1x1x128xf32> to vector<1x128xf32>
    %40 = vector.broadcast %39 : vector<1x128xf32> to vector<16x128xf32>
    %41 = arith.addf %37, %40 : vector<16x128xf32>
    %cst_42 = arith.constant 0.000000e+00 : f32
    %42 = vector.broadcast %cst_42 : f32 to vector<16x128xf32>
    %43 = arith.maximumf %41, %42 : vector<16x128xf32>
    %c2 = arith.constant 2 : index
    %c0_43 = arith.constant 0 : index
    %c0_44 = arith.constant 0 : index
    %44 = vector.load %arg3[%c2, %c0_43, %c0_44] : memref<8x256x128xbf16, #tpu.memory_space<vmem>>, vector<1x256x128xbf16>
    %45 = vector.shape_cast %44 : vector<1x256x128xbf16> to vector<256x128xbf16>
    %46 = vector.extract_strided_slice %45 {offsets = [0, 0], sizes = [128, 128], strides = [1, 1]} : vector<256x128xbf16> to vector<128x128xbf16>
    %cst_45 = arith.constant dense<0.000000e+00> : vector<16x128xf32>
    %47 = tpu.matmul %4, %46, %cst_45 {dimension_numbers = #tpu.dot_dimension_numbers<[1], [0], [0], [1], [0, 0, 1, 1], [], []>} : vector<16x128xbf16>, vector<128x128xbf16>, vector<16x128xf32> -> vector<16x128xf32>
    %c2_46 = arith.constant 2 : index
    %c0_47 = arith.constant 0 : index
    %c0_48 = arith.constant 0 : index
    %48 = vector.load %arg4[%c2_46, %c0_47, %c0_48] : memref<8x1x128xf32, #tpu.memory_space<vmem>>, vector<1x1x128xf32>
    %49 = vector.shape_cast %48 : vector<1x1x128xf32> to vector<1x128xf32>
    %50 = vector.broadcast %49 : vector<1x128xf32> to vector<16x128xf32>
    %51 = arith.addf %47, %50 : vector<16x128xf32>
    %52 = arith.addf %43, %51 : vector<16x128xf32>
    %cst_49 = arith.constant 0.000000e+00 : f32
    %53 = vector.broadcast %cst_49 : f32 to vector<16x128xf32>
    %54 = arith.maximumf %52, %53 : vector<16x128xf32>
    %55 = arith.truncf %54 : vector<16x128xf32> to vector<16x128xbf16>
    %c2_50 = arith.constant 2 : index
    %c0_51 = arith.constant 0 : index
    %c0_52 = arith.constant 0 : index
    %56 = vector.load %arg7[%c2_50, %c0_51, %c0_52] : memref<6x16x128xbf16, #tpu.memory_space<vmem>>, vector<1x16x128xbf16>
    %57 = vector.shape_cast %56 : vector<1x16x128xbf16> to vector<16x128xbf16>
    %c0_53 = arith.constant 0 : index
    %c0_54 = arith.constant 0 : index
    %58 = vector.load %arg6[%c0_53, %c0_54] : memref<32x128xbf16, #tpu.memory_space<vmem>>, vector<16x128xbf16>
    tpu.vector_store %arg6[%c0_53, %c0_54], %57 {strides = array<i32>} : memref<32x128xbf16, #tpu.memory_space<vmem>>, vector<16x128xbf16>,
    %c16_55 = arith.constant 16 : index
    %c0_56 = arith.constant 0 : index
    %59 = vector.load %arg6[%c16_55, %c0_56] : memref<32x128xbf16, #tpu.memory_space<vmem>>, vector<16x128xbf16>
    tpu.vector_store %arg6[%c16_55, %c0_56], %55 {strides = array<i32>} : memref<32x128xbf16, #tpu.memory_space<vmem>>, vector<16x128xbf16>,
    %c14 = arith.constant 14 : index
    %c0_57 = arith.constant 0 : index
    %60 = vector.load %arg6[%c14, %c0_57] : memref<32x128xbf16, #tpu.memory_space<vmem>>, vector<16x128xbf16>
    %61 = tpu.concatenate %60, %55 in 1 : vector<16x128xbf16>, vector<16x128xbf16> -> vector<16x256xbf16>
    %c16_58 = arith.constant 16 : index
    %c0_59 = arith.constant 0 : index
    %62 = vector.load %arg6[%c16_58, %c0_59] : memref<32x128xbf16, #tpu.memory_space<vmem>>, vector<16x128xbf16>
    %c2_60 = arith.constant 2 : index
    %c0_61 = arith.constant 0 : index
    %c0_62 = arith.constant 0 : index
    %63 = vector.load %arg7[%c2_60, %c0_61, %c0_62] : memref<6x16x128xbf16, #tpu.memory_space<vmem>>, vector<1x16x128xbf16>
    %64 = vector.shape_cast %63 : vector<1x16x128xbf16> to vector<16x128xbf16>
    %65 = vector.shape_cast %62 : vector<16x128xbf16> to vector<1x16x128xbf16>
    tpu.vector_store %arg7[%c2_60, %c0_61, %c0_62], %65 {strides = array<i32>} : memref<6x16x128xbf16, #tpu.memory_space<vmem>>, vector<1x16x128xbf16>,
    %c3 = arith.constant 3 : index
    %c0_63 = arith.constant 0 : index
    %c0_64 = arith.constant 0 : index
    %66 = vector.load %arg3[%c3, %c0_63, %c0_64] : memref<8x256x128xbf16, #tpu.memory_space<vmem>>, vector<1x256x128xbf16>
    %67 = vector.shape_cast %66 : vector<1x256x128xbf16> to vector<256x128xbf16>
    %cst_65 = arith.constant dense<0.000000e+00> : vector<16x128xf32>
    %68 = tpu.matmul %61, %67, %cst_65 {dimension_numbers = #tpu.dot_dimension_numbers<[1], [0], [0], [1], [0, 0, 1, 1], [], []>} : vector<16x256xbf16>, vector<256x128xbf16>, vector<16x128xf32> -> vector<16x128xf32>
    %c3_66 = arith.constant 3 : index
    %c0_67 = arith.constant 0 : index
    %c0_68 = arith.constant 0 : index
    %69 = vector.load %arg4[%c3_66, %c0_67, %c0_68] : memref<8x1x128xf32, #tpu.memory_space<vmem>>, vector<1x1x128xf32>
    %70 = vector.shape_cast %69 : vector<1x1x128xf32> to vector<1x128xf32>
    %71 = vector.broadcast %70 : vector<1x128xf32> to vector<16x128xf32>
    %72 = arith.addf %68, %71 : vector<16x128xf32>
    %cst_69 = arith.constant 0.000000e+00 : f32
    %73 = vector.broadcast %cst_69 : f32 to vector<16x128xf32>
    %74 = arith.maximumf %72, %73 : vector<16x128xf32>
    %75 = arith.truncf %74 : vector<16x128xf32> to vector<16x128xbf16>
    %c3_70 = arith.constant 3 : index
    %c0_71 = arith.constant 0 : index
    %c0_72 = arith.constant 0 : index
    %76 = vector.load %arg7[%c3_70, %c0_71, %c0_72] : memref<6x16x128xbf16, #tpu.memory_space<vmem>>, vector<1x16x128xbf16>
    %77 = vector.shape_cast %76 : vector<1x16x128xbf16> to vector<16x128xbf16>
    %c0_73 = arith.constant 0 : index
    %c0_74 = arith.constant 0 : index
    %78 = vector.load %arg6[%c0_73, %c0_74] : memref<32x128xbf16, #tpu.memory_space<vmem>>, vector<16x128xbf16>
    tpu.vector_store %arg6[%c0_73, %c0_74], %77 {strides = array<i32>} : memref<32x128xbf16, #tpu.memory_space<vmem>>, vector<16x128xbf16>,
    %c16_75 = arith.constant 16 : index
    %c0_76 = arith.constant 0 : index
    %79 = vector.load %arg6[%c16_75, %c0_76] : memref<32x128xbf16, #tpu.memory_space<vmem>>, vector<16x128xbf16>
    tpu.vector_store %arg6[%c16_75, %c0_76], %75 {strides = array<i32>} : memref<32x128xbf16, #tpu.memory_space<vmem>>, vector<16x128xbf16>,
    %c14_77 = arith.constant 14 : index
    %c0_78 = arith.constant 0 : index
    %80 = vector.load %arg6[%c14_77, %c0_78] : memref<32x128xbf16, #tpu.memory_space<vmem>>, vector<16x128xbf16>
    %81 = tpu.concatenate %80, %75 in 1 : vector<16x128xbf16>, vector<16x128xbf16> -> vector<16x256xbf16>
    %c16_79 = arith.constant 16 : index
    %c0_80 = arith.constant 0 : index
    %82 = vector.load %arg6[%c16_79, %c0_80] : memref<32x128xbf16, #tpu.memory_space<vmem>>, vector<16x128xbf16>
    %c3_81 = arith.constant 3 : index
    %c0_82 = arith.constant 0 : index
    %c0_83 = arith.constant 0 : index
    %83 = vector.load %arg7[%c3_81, %c0_82, %c0_83] : memref<6x16x128xbf16, #tpu.memory_space<vmem>>, vector<1x16x128xbf16>
    %84 = vector.shape_cast %83 : vector<1x16x128xbf16> to vector<16x128xbf16>
    %85 = vector.shape_cast %82 : vector<16x128xbf16> to vector<1x16x128xbf16>
    tpu.vector_store %arg7[%c3_81, %c0_82, %c0_83], %85 {strides = array<i32>} : memref<6x16x128xbf16, #tpu.memory_space<vmem>>, vector<1x16x128xbf16>,
    %c4 = arith.constant 4 : index
    %c0_84 = arith.constant 0 : index
    %c0_85 = arith.constant 0 : index
    %86 = vector.load %arg3[%c4, %c0_84, %c0_85] : memref<8x256x128xbf16, #tpu.memory_space<vmem>>, vector<1x256x128xbf16>
    %87 = vector.shape_cast %86 : vector<1x256x128xbf16> to vector<256x128xbf16>
    %cst_86 = arith.constant dense<0.000000e+00> : vector<16x128xf32>
    %88 = tpu.matmul %81, %87, %cst_86 {dimension_numbers = #tpu.dot_dimension_numbers<[1], [0], [0], [1], [0, 0, 1, 1], [], []>} : vector<16x256xbf16>, vector<256x128xbf16>, vector<16x128xf32> -> vector<16x128xf32>
    %c4_87 = arith.constant 4 : index
    %c0_88 = arith.constant 0 : index
    %c0_89 = arith.constant 0 : index
    %89 = vector.load %arg4[%c4_87, %c0_88, %c0_89] : memref<8x1x128xf32, #tpu.memory_space<vmem>>, vector<1x1x128xf32>
    %90 = vector.shape_cast %89 : vector<1x1x128xf32> to vector<1x128xf32>
    %91 = vector.broadcast %90 : vector<1x128xf32> to vector<16x128xf32>
    %92 = arith.addf %88, %91 : vector<16x128xf32>
    %cst_90 = arith.constant 0.000000e+00 : f32
    %93 = vector.broadcast %cst_90 : f32 to vector<16x128xf32>
    %94 = arith.maximumf %92, %93 : vector<16x128xf32>
    %95 = arith.extf %55 : vector<16x128xbf16> to vector<16x128xf32>
    %96 = arith.addf %94, %95 : vector<16x128xf32>
    %cst_91 = arith.constant 0.000000e+00 : f32
    %97 = vector.broadcast %cst_91 : f32 to vector<16x128xf32>
    %98 = arith.maximumf %96, %97 : vector<16x128xf32>
    %99 = arith.truncf %98 : vector<16x128xf32> to vector<16x128xbf16>
    %c4_92 = arith.constant 4 : index
    %c0_93 = arith.constant 0 : index
    %c0_94 = arith.constant 0 : index
    %100 = vector.load %arg7[%c4_92, %c0_93, %c0_94] : memref<6x16x128xbf16, #tpu.memory_space<vmem>>, vector<1x16x128xbf16>
    %101 = vector.shape_cast %100 : vector<1x16x128xbf16> to vector<16x128xbf16>
    %c0_95 = arith.constant 0 : index
    %c0_96 = arith.constant 0 : index
    %102 = vector.load %arg6[%c0_95, %c0_96] : memref<32x128xbf16, #tpu.memory_space<vmem>>, vector<16x128xbf16>
    tpu.vector_store %arg6[%c0_95, %c0_96], %101 {strides = array<i32>} : memref<32x128xbf16, #tpu.memory_space<vmem>>, vector<16x128xbf16>,
    %c16_97 = arith.constant 16 : index
    %c0_98 = arith.constant 0 : index
    %103 = vector.load %arg6[%c16_97, %c0_98] : memref<32x128xbf16, #tpu.memory_space<vmem>>, vector<16x128xbf16>
    tpu.vector_store %arg6[%c16_97, %c0_98], %99 {strides = array<i32>} : memref<32x128xbf16, #tpu.memory_space<vmem>>, vector<16x128xbf16>,
    %c12 = arith.constant 12 : index
    %c0_99 = arith.constant 0 : index
    %104 = vector.load %arg6[%c12, %c0_99] : memref<32x128xbf16, #tpu.memory_space<vmem>>, vector<16x128xbf16>
    %105 = tpu.concatenate %104, %99 in 1 : vector<16x128xbf16>, vector<16x128xbf16> -> vector<16x256xbf16>
    %c16_100 = arith.constant 16 : index
    %c0_101 = arith.constant 0 : index
    %106 = vector.load %arg6[%c16_100, %c0_101] : memref<32x128xbf16, #tpu.memory_space<vmem>>, vector<16x128xbf16>
    %c4_102 = arith.constant 4 : index
    %c0_103 = arith.constant 0 : index
    %c0_104 = arith.constant 0 : index
    %107 = vector.load %arg7[%c4_102, %c0_103, %c0_104] : memref<6x16x128xbf16, #tpu.memory_space<vmem>>, vector<1x16x128xbf16>
    %108 = vector.shape_cast %107 : vector<1x16x128xbf16> to vector<16x128xbf16>
    %109 = vector.shape_cast %106 : vector<16x128xbf16> to vector<1x16x128xbf16>
    tpu.vector_store %arg7[%c4_102, %c0_103, %c0_104], %109 {strides = array<i32>} : memref<6x16x128xbf16, #tpu.memory_space<vmem>>, vector<1x16x128xbf16>,
    %c5 = arith.constant 5 : index
    %c0_105 = arith.constant 0 : index
    %c0_106 = arith.constant 0 : index
    %110 = vector.load %arg3[%c5, %c0_105, %c0_106] : memref<8x256x128xbf16, #tpu.memory_space<vmem>>, vector<1x256x128xbf16>
    %111 = vector.shape_cast %110 : vector<1x256x128xbf16> to vector<256x128xbf16>
    %cst_107 = arith.constant dense<0.000000e+00> : vector<16x128xf32>
    %112 = tpu.matmul %105, %111, %cst_107 {dimension_numbers = #tpu.dot_dimension_numbers<[1], [0], [0], [1], [0, 0, 1, 1], [], []>} : vector<16x256xbf16>, vector<256x128xbf16>, vector<16x128xf32> -> vector<16x128xf32>
    %c5_108 = arith.constant 5 : index
    %c0_109 = arith.constant 0 : index
    %c0_110 = arith.constant 0 : index
    %113 = vector.load %arg4[%c5_108, %c0_109, %c0_110] : memref<8x1x128xf32, #tpu.memory_space<vmem>>, vector<1x1x128xf32>
    %114 = vector.shape_cast %113 : vector<1x1x128xf32> to vector<1x128xf32>
    %115 = vector.broadcast %114 : vector<1x128xf32> to vector<16x128xf32>
    %116 = arith.addf %112, %115 : vector<16x128xf32>
    %cst_111 = arith.constant 0.000000e+00 : f32
    %117 = vector.broadcast %cst_111 : f32 to vector<16x128xf32>
    %118 = arith.maximumf %116, %117 : vector<16x128xf32>
    %119 = arith.truncf %118 : vector<16x128xf32> to vector<16x128xbf16>
    %c5_112 = arith.constant 5 : index
    %c0_113 = arith.constant 0 : index
    %c0_114 = arith.constant 0 : index
    %120 = vector.load %arg7[%c5_112, %c0_113, %c0_114] : memref<6x16x128xbf16, #tpu.memory_space<vmem>>, vector<1x16x128xbf16>
    %121 = vector.shape_cast %120 : vector<1x16x128xbf16> to vector<16x128xbf16>
    %c0_115 = arith.constant 0 : index
    %c0_116 = arith.constant 0 : index
    %122 = vector.load %arg6[%c0_115, %c0_116] : memref<32x128xbf16, #tpu.memory_space<vmem>>, vector<16x128xbf16>
    tpu.vector_store %arg6[%c0_115, %c0_116], %121 {strides = array<i32>} : memref<32x128xbf16, #tpu.memory_space<vmem>>, vector<16x128xbf16>,
    %c16_117 = arith.constant 16 : index
    %c0_118 = arith.constant 0 : index
    %123 = vector.load %arg6[%c16_117, %c0_118] : memref<32x128xbf16, #tpu.memory_space<vmem>>, vector<16x128xbf16>
    tpu.vector_store %arg6[%c16_117, %c0_118], %119 {strides = array<i32>} : memref<32x128xbf16, #tpu.memory_space<vmem>>, vector<16x128xbf16>,
    %c12_119 = arith.constant 12 : index
    %c0_120 = arith.constant 0 : index
    %124 = vector.load %arg6[%c12_119, %c0_120] : memref<32x128xbf16, #tpu.memory_space<vmem>>, vector<16x128xbf16>
    %125 = tpu.concatenate %124, %119 in 1 : vector<16x128xbf16>, vector<16x128xbf16> -> vector<16x256xbf16>
    %c16_121 = arith.constant 16 : index
    %c0_122 = arith.constant 0 : index
    %126 = vector.load %arg6[%c16_121, %c0_122] : memref<32x128xbf16, #tpu.memory_space<vmem>>, vector<16x128xbf16>
    %c5_123 = arith.constant 5 : index
    %c0_124 = arith.constant 0 : index
    %c0_125 = arith.constant 0 : index
    %127 = vector.load %arg7[%c5_123, %c0_124, %c0_125] : memref<6x16x128xbf16, #tpu.memory_space<vmem>>, vector<1x16x128xbf16>
    %128 = vector.shape_cast %127 : vector<1x16x128xbf16> to vector<16x128xbf16>
    %129 = vector.shape_cast %126 : vector<16x128xbf16> to vector<1x16x128xbf16>
    tpu.vector_store %arg7[%c5_123, %c0_124, %c0_125], %129 {strides = array<i32>} : memref<6x16x128xbf16, #tpu.memory_space<vmem>>, vector<1x16x128xbf16>,
    %c6 = arith.constant 6 : index
    %c0_126 = arith.constant 0 : index
    %c0_127 = arith.constant 0 : index
    %130 = vector.load %arg3[%c6, %c0_126, %c0_127] : memref<8x256x128xbf16, #tpu.memory_space<vmem>>, vector<1x256x128xbf16>
    %131 = vector.shape_cast %130 : vector<1x256x128xbf16> to vector<256x128xbf16>
    %cst_128 = arith.constant dense<0.000000e+00> : vector<16x128xf32>
    %132 = tpu.matmul %125, %131, %cst_128 {dimension_numbers = #tpu.dot_dimension_numbers<[1], [0], [0], [1], [0, 0, 1, 1], [], []>} : vector<16x256xbf16>, vector<256x128xbf16>, vector<16x128xf32> -> vector<16x128xf32>
    %c6_129 = arith.constant 6 : index
    %c0_130 = arith.constant 0 : index
    %c0_131 = arith.constant 0 : index
    %133 = vector.load %arg4[%c6_129, %c0_130, %c0_131] : memref<8x1x128xf32, #tpu.memory_space<vmem>>, vector<1x1x128xf32>
    %134 = vector.shape_cast %133 : vector<1x1x128xf32> to vector<1x128xf32>
    %135 = vector.broadcast %134 : vector<1x128xf32> to vector<16x128xf32>
    %136 = arith.addf %132, %135 : vector<16x128xf32>
    %cst_132 = arith.constant 0.000000e+00 : f32
    %137 = vector.broadcast %cst_132 : f32 to vector<16x128xf32>
    %138 = arith.maximumf %136, %137 : vector<16x128xf32>
    %c7 = arith.constant 7 : index
    %c0_133 = arith.constant 0 : index
    %c0_134 = arith.constant 0 : index
    %139 = vector.load %arg3[%c7, %c0_133, %c0_134] : memref<8x256x128xbf16, #tpu.memory_space<vmem>>, vector<1x256x128xbf16>
    %140 = vector.shape_cast %139 : vector<1x256x128xbf16> to vector<256x128xbf16>
    %141 = vector.extract_strided_slice %140 {offsets = [0, 0], sizes = [128, 128], strides = [1, 1]} : vector<256x128xbf16> to vector<128x128xbf16>
    %cst_135 = arith.constant dense<0.000000e+00> : vector<16x128xf32>
    %142 = tpu.matmul %99, %141, %cst_135 {dimension_numbers = #tpu.dot_dimension_numbers<[1], [0], [0], [1], [0, 0, 1, 1], [], []>} : vector<16x128xbf16>, vector<128x128xbf16>, vector<16x128xf32> -> vector<16x128xf32>
    %c7_136 = arith.constant 7 : index
    %c0_137 = arith.constant 0 : index
    %c0_138 = arith.constant 0 : index
    %143 = vector.load %arg4[%c7_136, %c0_137, %c0_138] : memref<8x1x128xf32, #tpu.memory_space<vmem>>, vector<1x1x128xf32>
    %144 = vector.shape_cast %143 : vector<1x1x128xf32> to vector<1x128xf32>
    %145 = vector.broadcast %144 : vector<1x128xf32> to vector<16x128xf32>
    %146 = arith.addf %142, %145 : vector<16x128xf32>
    %147 = arith.addf %138, %146 : vector<16x128xf32>
    %cst_139 = arith.constant 0.000000e+00 : f32
    %148 = vector.broadcast %cst_139 : f32 to vector<16x128xf32>
    %149 = arith.maximumf %147, %148 : vector<16x128xf32>
    %150 = arith.truncf %149 : vector<16x128xf32> to vector<16x128xbf16>
    %c0_140 = arith.constant 0 : index
    %c0_141 = arith.constant 0 : index
    %c0_142 = arith.constant 0 : index
    %151 = vector.load %arg5[%c0_140, %c0_141, %c0_142] : memref<1x16x128xbf16, #tpu.memory_space<vmem>>, vector<1x16x128xbf16>
    %152 = vector.shape_cast %151 : vector<1x16x128xbf16> to vector<16x128xbf16>
    %153 = vector.shape_cast %150 : vector<16x128xbf16> to vector<1x16x128xbf16>
    tpu.vector_store %arg5[%c0_140, %c0_141, %c0_142], %153 {strides = array<i32>} : memref<1x16x128xbf16, #tpu.memory_space<vmem>>, vector<1x16x128xbf16>,
    return
  }
  func.func @transform_0(%arg0: i32, %arg1: i32) -> (i32, i32, i32) {
    %c0_i32 = arith.constant 0 : i32
    %c0_i32_0 = arith.constant 0 : i32
    return %arg0, %arg1, %c0_i32 : i32, i32, i32
  }
  func.func @transform_1(%arg0: i32, %arg1: i32) -> (i32, i32, i32) {
    %c0_i32 = arith.constant 0 : i32
    %c0_i32_0 = arith.constant 0 : i32
    %c0_i32_1 = arith.constant 0 : i32
    %c0_i32_2 = arith.constant 0 : i32
    return %c0_i32, %c0_i32_0, %c0_i32_1 : i32, i32, i32
  }
  func.func @transform_2(%arg0: i32, %arg1: i32) -> (i32, i32, i32) {
    %c0_i32 = arith.constant 0 : i32
    %c0_i32_0 = arith.constant 0 : i32
    %c0_i32_1 = arith.constant 0 : i32
    %c0_i32_2 = arith.constant 0 : i32
    return %c0_i32, %c0_i32_0, %c0_i32_1 : i32, i32, i32
  }
  func.func @transform_3(%arg0: i32, %arg1: i32) -> (i32, i32, i32) {
    %c0_i32 = arith.constant 0 : i32
    %c0_i32_0 = arith.constant 0 : i32
    return %arg0, %arg1, %c0_i32 : i32, i32, i32
  }
}

</mosaic_0001>

<bundles_post_ra>
// kernel: tpu_custom_call.1
= control target key start
LH: loop header
LB: loop body
LE: loop exit
PB: predicated region body
PF: predicated region fallthrough
CT: control target
= control target key end

     0   :  { %s2996_s0 = inlined_call_operand.hbm [shape: bf16[2,64,128], index: 0, kind: input, shape index: {}]   ;;  %s2997_s1 = inlined_call_operand.hbm [shape: bf16[8,256,128], index: 1, kind: input, shape index: {}]   ;;  %s2998_s2 = inlined_call_operand.hbm [shape: f32[8,1,128], index: 2, kind: input, shape index: {}]   ;;  %s2999_s3 = inlined_call_operand.hbm [shape: bf16[2,64,128], index: 3, kind: output, shape index: {}]  }
   0x1   :  { %3009 = sst [smem:[#allocation17_spill]] %s2997_s1 }
   0x2   :  { %3010 = sst [smem:[#allocation18_spill]] %s2998_s2 }
   0x3   :  { %8 = vsyncpa [#allocation5], 0 }
   0x4   :  { %10 = vsyncpa [#allocation5 + $0x1], 0 }
   0x5   :  { %11 = vsyncpa [#allocation8], 0 }
   0x6   :  { %12 = vsyncpa [#allocation6], 0 }
   0x7   :  { %14 = vsyncpa [#allocation6 + $0x1], 0  ;;  %s2665_s12 = smov 0   ;;  %s2667_s13 = smov 0  }
   0x8   :  { %s2669_s14 = smov 0   ;;  %s2671_s15 = smov 0  }
   0x9   :  { %s2673_s16 = smov 0   ;;  %s2675_s17 = smov 0  }
   0xa   :  { %s2677_s18 = smov 0   ;;  %s2679_s19 = smov 0  }
   0xb LB: > { %3011 = sst [smem:[#allocation14_spill]] %s2602_s12  ;;  %s1875_s20 = sadd.s32 4294967295, %s2630_s19   ;;  %s2630_s19 = sphi %s2679_s19, %s20_s19   ;;  %s2626_s18 = sphi %s2677_s18, %s3041_s18   ;;  %s2622_s17 = sphi %s2675_s17, %s3040_s17   ;;  %s2618_s16 = sphi %s2673_s16, %s3039_s16   ;;  %s2614_s15 = sphi %s2671_s15, %s3038_s15   ;;  %s2610_s14 = sphi %s2669_s14, %s3037_s14   ;;  %s2606_s13 = sphi %s2667_s13, %s3036_s13   ;;  %s2602_s12 = sphi %s2665_s12, %s3035_s12  }
   0xc   : > { %s1876_s21 = sadd.s32 4294967294, %s2630_s19   ;;  %p54_p0 = scmp.ne.s32.totalorder %s2606_s13, %s2602_s12 }
   0xd   : > { %p2709_p1 = scmp.eq.s32.totalorder %s1875_s20, 0  ;;  %p2713_p2 = scmp.eq.s32.totalorder %s1875_s20, 7 }
   0xe   : > { %p128_p3 = scmp.eq.s32.totalorder %s1876_s21, 7  ;;  %p1877_p5 = scmp.ge.s32.totalorder %s2630_s19, 1 }
   0xf   : > { %s3012_s22 = scalar_select %p2709_p1, 1, 0 }
  0x10   : > { %s3013_s23 = scalar_select %p2713_p2, 1, 0 }
  0x11   : > { %p2719_p4 = por %p2709_p1, %p54_p0  ;;  %p2724_p6 = por %p128_p3, %p54_p0 }
  0x12   : > { %p135_p7 = scmp.lt.s32.totalorder %s2630_s19, 9  ;;  %s2632_s27 = smov [#allocation7]  }
  0x13   : > { %s3014_s24 = scalar_select %p2719_p4, 1, 0 }
  0x14   : > { %s3015_s25 = scalar_select %p2724_p6, 1, 0 }
  0x15   : > { %p2729_p8 = pnand %p1877_p5, %p135_p7  ;;  %s147_s28 = sshll.u32 %s2632_s27, 4  ;;  %s148_s28 = int_to_ptr.vmem [resolvable:$true] %s147_s28 }
  0x16   : > { %3016 = sst [smem:[#allocation15_spill]] %s3015_s25  ;;  %s2633_s30 = smov [#allocation9]  }
  0x17   : > { %s3017_s26 = scalar_select %p2729_p8, 1, 0 }
  0x18   : > { %p2233_p9 = pneg %p2729_p8  ;;  %s160_s4 = sshll.u32 %s2633_s30, 4  ;;  %s2741_s4 = int_to_ptr.vmem [resolvable:$true] %s160_s4 }
  0x19   : > { %s3019_s1 = sld [smem:[#allocation17_spill]] }
  0x1a   : > { %p2737_p10 = pnand %p2233_p9, %p2709_p1 }
  0x1c   : > { %p2444_p12 = pneg %p2737_p10 }
  0x1f   : > { %s2442_s7 = scalar_lea.hbm %s3019_s1, 16384 }
  0x20   : > { %p2443_p11 = scmp.ne.s32.totalorder %s3019_s1, %s2442_s7  ;;  %p2449_p3 = scmp.lt.u32.totalorder %s2442_s7, %s3019_s1 }
  0x22   : > { %p2445_p13 = pnand %p2444_p12, %p2443_p11 }
  0x24   : > { %p2446_p0 = pneg %p2445_p13 }
  0x26   : > { %p2451_p5 = pnand %p2449_p3, %p2446_p0 }
  0x28   : > { %2454 = shalt.err (!%p2451_p5)
}
  0x29   : > { %s2455_s20 = scalar_lea.vmem %s148_s28, 16384  ;;  %p2463_p1 = scmp.lt.s32.totalorder %s148_s28, %s148_s28 }
  0x2a   : > { %p2456_p7 = scmp.ne.s32.totalorder %s148_s28, %s2455_s20  ;;  %p2464_p4 = scmp.lt.s32.totalorder %s2455_s20, %s2455_s20 }
  0x2c   : > { %p2458_p9 = pnand %p2456_p7, %p2444_p12  ;;  %p2465_p8 = por %p2464_p4, %p2463_p1 }
  0x2e   : > { %p2459_p6 = pneg %p2458_p9 }
  0x30   : > { %p2466_p2 = pnand %p2465_p8, %p2459_p6 }
  0x32   : > { %2469 = shalt.err (!%p2466_p2)
}
  0x33   : > { %s3004_s21 = smov 64   ;;  %s3005_s27 = smov 4  }
  0x34   : > { %2236 = dma.hbm_to_vmem [thread:$0]  (!%p2737_p10), %s3019_s1, 16384, %s148_s28, [#allocation8], %s3004_s21, %s3004_s21, %s3005_s27  }
  0x35   : > { %s3020_s2 = sld [smem:[#allocation18_spill]] }
  0x3b   : > { %s2470_s8 = scalar_lea.hbm %s3020_s2, 128 }
  0x3c   : > { %p2471_p1 = scmp.ne.s32.totalorder %s3020_s2, %s2470_s8  ;;  %p2477_p6 = scmp.lt.u32.totalorder %s2470_s8, %s3020_s2 }
  0x3e   : > { %p2473_p2 = pnand %p2471_p1, %p2444_p12 }
  0x40   : > { %p2474_p4 = pneg %p2473_p2 }
  0x42   : > { %p2479_p8 = pnand %p2477_p6, %p2474_p4 }
  0x44   : > { %2482 = shalt.err (!%p2479_p8)
}
  0x45   : > { %s2483_s28 = scalar_lea.vmem %s2741_s4, 128  ;;  %p2491_p3 = scmp.lt.s32.totalorder %s2741_s4, %s2741_s4 }
  0x46   : > { %p2484_p11 = scmp.ne.s32.totalorder %s2741_s4, %s2483_s28  ;;  %p2492_p5 = scmp.lt.s32.totalorder %s2483_s28, %s2483_s28 }
  0x48   : > { %p2486_p13 = pnand %p2484_p11, %p2444_p12  ;;  %p2493_p7 = por %p2492_p5, %p2491_p3 }
  0x4a   : > { %p2487_p0 = pneg %p2486_p13 }
  0x4c   : > { %p2494_p9 = pnand %p2493_p7, %p2487_p0 }
  0x4e   : > { %2497 = shalt.err (!%p2494_p9)
}
  0x4f   : > { %s2636_s30 = smov 16   ;;  %s2637_s5 = smov 1  }
  0x50   : > { %2239 = dma.hbm_to_vmem [thread:$0]  (!%p2737_p10), %s3020_s2, 128, %s2741_s4, [#allocation8], %s2636_s30, %s2636_s30, %s2637_s5  }
  0x51   : > { %s29_s8 = sadd.s32 1, %s2622_s17  ;;  %s32_s9 = sadd.s32 1, %s2626_s18 }
  0x52   : > { %p30_p12 = scmp.ge.s32.totalorder %s29_s8, 4  ;;  %s41_s10 = sadd.s32 1, %s2610_s14 }
  0x53   : > { %p48_p1 = scmp.ne.s32.totalorder %s2610_s14, %s2606_s13  ;;  %p49_p2 = scmp.eq.s32.totalorder %s2630_s19, 0 }
  0x54   : > { %s3043_s8 = smov (%p30_p12, %s29_s8), 0  ;;  %s3045_s9 = smov (!%p30_p12, %s32_s9), %s2626_s18 }
  0x55   : > { %3021 = sst [smem:[#allocation16_spill]] %s3043_s8  ;;  %s37_s11 = ssub.s32 %s2622_s17, %s3043_s8 }
  0x56   : > { %p2804_p4 = por %p49_p2, %p48_p1  ;;  %p34_p10 = scmp.ge.s32.totalorder %s3045_s9, 2 }
  0x57   : > { %p3023_p6 = scmp.ne.s32.totalorder %s3013_s23, 0  ;;  %p2250_p11 = scmp.lt.s32.totalorder %s2630_s19, 8 }
  0x58   : > { %s174_s20 = sand.u32 1, %s2610_s14   ;;  %s3047_s9 = smov (%p34_p10, %s3045_s9), 0 }
  0x59   : > { %p2810_p8 = por %p3023_p6, %p48_p1  ;;  %s1881_s28 = sshll.u32 %s174_s20, 3 }
  0x5a   : > { %s36_s30 = ssub.s32 %s2626_s18, %s3047_s9  ;;  %s1882_s6 = sshll.u32 %s2622_s17, 1 }
  0x5b   : > { %s38_s5 = sor.u32 %s37_s11, %s36_s30  ;;  %s1883_s7 = sshll.u32 %s2626_s18, 3 }
  0x5c   : > { %p39_p13 = scmp.eq.s32.totalorder %s38_s5, 0  ;;  %s184_s21 = sadd.s32 %s1883_s7, %s1882_s6 }
  0x5d   : > { %s178_s27 = scalar_lea.vmem [#allocation4], %s1881_s28  ;;  %s1884_s2 = sshll.u32 %s184_s21, 6 }
  0x5e   : > { %s187_s23 = sshll.u32 %s178_s27, 4  ;;  %s2830_s12 = scalar_lea.hbm %s2996_s0, %s1884_s2  ;;  %s2825_s23 = int_to_ptr.vmem [resolvable:$true] %s187_s23 }
  0x5f   : > { %s2823_s1 = scalar_select %p39_p13, %s2610_s14, %s41_s10  }
  0x60   : > { %p2836_p0 = pnand %p2250_p11, %p2804_p4  ;;  %s2840_s21 = scalar_lea.sflag [#allocation5], %s174_s20 }
  0x61   : > { %s2498_s27 = scalar_lea.hbm %s2830_s12, 128  ;;  %s2503_s8 = scalar_lea.hbm %s2996_s0, 1024 }
  0x62   : > { %p2499_p3 = scmp.ne.s32.totalorder %s2830_s12, %s2498_s27  ;;  %p2500_p5 = pneg %p2836_p0 }
  0x63   : > { %p2504_p12 = scmp.lt.u32.totalorder %s2830_s12, %s2996_s0  ;;  %p2505_p1 = scmp.lt.u32.totalorder %s2503_s8, %s2498_s27 }
  0x64   : > { %p2501_p7 = pnand %p2500_p5, %p2499_p3  ;;  %p2507_p4 = scmp.lt.u32.totalorder %s2498_s27, %s2830_s12 }
  0x65   : > { %p2506_p2 = por %p2505_p1, %p2504_p12 }
  0x66   : > { %p2502_p9 = pneg %p2501_p7 }
  0x67   : > { %p2508_p10 = por %p2507_p4, %p2506_p2 }
  0x69   : > { %p2509_p6 = pnand %p2508_p10, %p2502_p9 }
  0x6b   : > { %2512 = shalt.err (!%p2509_p6)
}
  0x6c   : > { %s2513_s20 = scalar_lea.vmem %s2825_s23, 128  ;;  %s2638_s28 = smov [#allocation4]  }
  0x6d   : > { %p2514_p11 = scmp.ne.s32.totalorder %s2825_s23, %s2513_s20  ;;  %s2518_s30 = sshll.u32 %s2638_s28, 4  ;;  %s2519_s30 = int_to_ptr.vmem [resolvable:$false] %s2518_s30 }
  0x6e   : > { %s2520_s5 = scalar_lea.vmem %s2519_s30, 256  ;;  %p2521_p7 = scmp.lt.s32.totalorder %s2825_s23, %s2519_s30 }
  0x6f   : > { %p2516_p13 = pnand %p2514_p11, %p2500_p5  ;;  %p2522_p12 = scmp.lt.s32.totalorder %s2520_s5, %s2513_s20 }
  0x71   : > { %p2517_p3 = pneg %p2516_p13  ;;  %p2523_p1 = por %p2522_p12, %p2521_p7 }
  0x73   : > { %p2524_p2 = pnand %p2523_p1, %p2517_p3 }
  0x75   : > { %2527 = shalt.err (!%p2524_p2)
}
  0x76   : > { %s3026_s6 = smov 4   ;;  %s3027_s7 = smov 64  }
  0x77   : > { %2243 = dma.hbm_to_vmem [thread:$0]  (!%p2836_p0), %s2830_s12, 128, %s2825_s23, %s2840_s21, %s3027_s7, %s3027_s7, %s3026_s6  }
  0x78   : > { %p3028_p5 = scmp.ne.s32.totalorder %s3017_s26, 0 }
  0x79   : > { %s2874_s27 = sand.u32 (!%p3028_p5), 1, %s2606_s13   ;;  %p3029_p9 = scmp.ne.s32.totalorder (!%p3028_p5), %s3014_s24, 0 }
  0x7a   : > { %199 = sbr.rel (%p3028_p5) target bundleno = 1598 (0x63e), region = 32  ;;  %s1886_s2 = sshll.u32 (!%p3028_p5), %s2874_s27, 3 }
  0x7b   : > { %s202_s25 = scalar_lea.sflag (!%p3028_p5), [#allocation5], %s2874_s27  ;;  %s2878_s8 = scalar_lea.vmem (!%p3028_p5), [#allocation4], %s1886_s2 }
  0x81   : > { %2589 = dma.done.wait (%p3029_p9), %s202_s25, 128  }
  0x82   : > { %2591 = vsyncadd (%p3029_p9), %s202_s25, 4294967168  ;;  %p3030_p0 = scmp.ne.s32.totalorder %s3012_s22, 0 }
  0x84   : > { %2593 = dma.done.wait (%p3030_p0), [#allocation8], 16512  }
  0x85   : > { %2595 = vsyncadd (%p3030_p0), [#allocation8], 4294950784  ;;  %s2888_s12 = scalar_lea.vmem [#allocation10], %s1886_s2  ;;  %p1890_p4 = scmp.ne.s32.totalorder %s2614_s15, 0 }
  0x86   : > { %v2639_v0 = vmov (!%p1890_p4), 0  }
  0x87   : > { %242 = sbr.rel (%p1890_p4) target bundleno = 142 (0x8e), region = 48  ;;  %243 = vst [vmem:[#allocation3] sm:$0xff] (!%p1890_p4), %v2639_v0  ;;  %244 = vst [vmem:[#allocation3 + $0x8] sm:$0xff] (!%p1890_p4), %v2639_v0 }
  0x88   : > { %245 = vst [vmem:[#allocation3 + $0x10] sm:$0xff] (!%p1890_p4), %v2639_v0  ;;  %246 = vst [vmem:[#allocation3 + $0x18] sm:$0xff] (!%p1890_p4), %v2639_v0 }
  0x89   : > { %247 = vst [vmem:[#allocation3 + $0x20] sm:$0xff] (!%p1890_p4), %v2639_v0  ;;  %248 = vst [vmem:[#allocation3 + $0x28] sm:$0xff] (!%p1890_p4), %v2639_v0 }
  0x8e PF: > { %v2329_v1 = vld [vmem:[#allocation7 + $0x40] sm:$0xff]   ;;  %v2331_v3 = vld [vmem:[#allocation7 + $0x48] sm:$0xff]   ;;  %v2333_v5 = vld [vmem:[#allocation7 + $0x50] sm:$0xff]   ;;  %vm309_vm0 = vsmask.f32 256  ;;  %v2640_v40 = vmov 0.0  }
  0x8f   : > { %v2330_v2 = vld [vmem:[#allocation7] sm:$0xff]   ;;  %2031 = vmatprep.subr.bf16.mxu0 %v2329_v1  ;;  %v2332_v4 = vld [vmem:[#allocation7 + $0x8] sm:$0xff]   ;;  %v2334_v6 = vld [vmem:[#allocation7 + $0x10] sm:$0xff]   ;;  %vm2641_vm1 = vmmov 0   ;;  %vm868_vm2 = vcmask 1040384   ;;  %vm1275_vm3 = vcmask 1041408  }
  0x90   : > { %2032 = vmatpush3.bf16.msra.mxu0 %v2330_v2  ;;  %v2335_v7 = vld [vmem:[#allocation7 + $0x58] sm:$0xff]   ;;  %v2337_v9 = vld [vmem:[#allocation7 + $0x60] sm:$0xff]   ;;  %v2339_v11 = vld [vmem:[#allocation7 + $0x68] sm:$0xff]   ;;  %s2019_s22 = sshll.u32 %s2614_s15, 1  ;;  %s2020_s24 = sshll.u32 %s2618_s16, 3 }
  0x91   : > { %2033 = vmatprep.subr.bf16.mxu0 %v2331_v3  ;;  %v2336_v8 = vld [vmem:[#allocation7 + $0x18] sm:$0xff]   ;;  %v2338_v10 = vld [vmem:[#allocation7 + $0x20] sm:$0xff]   ;;  %v2340_v13 = vld [vmem:[#allocation7 + $0x28] sm:$0xff]   ;;  %s1763_s26 = sadd.s32 %s2020_s24, %s2019_s22  ;;  %s1766_s11 = sshll.u32 %s2888_s12, 4  ;;  %s2941_s11 = int_to_ptr.vmem [resolvable:$true] %s1766_s11 }
  0x92   : > { %v2892_v12 = vld [vmem:[%s2878_s8] sm:$0xff]   ;;  %v251_v14 = vld [vmem:[#allocation3] sm:$0xff]  ;;  %v2349_v21 = vld [vmem:[#allocation7 + $0xc8] sm:$0xff]   ;;  %s2021_s23 = sshll.u32 %s1763_s26, 6  ;;  %s1751_s16 = scalar_lea.sflag [#allocation6], %s2874_s27 }
  0x93   : > { %v2346_v15 = vld [vmem:[#allocation7 + $0xc0] sm:$0xff]   ;;  %v2341_v16 = vld [vmem:[#allocation7 + $0x70] sm:$0xff]   ;;  %v263_v17 = vshll.u32 %v2892_v12, 16  ;;  %v266_v18 = vshrl.u32 %v2892_v12, 16  ;;  %252 = vst [vmem:[#allocation2] sm:$0xff] %v251_v14  ;;  %269 = vst [vmem:[#allocation3] sm:$0xff] %v2892_v12  ;;  %s2939_s15 = scalar_lea.hbm %s2999_s3, %s2021_s23 }
  0x94   : > { %2034 = vmatpush3.bf16.msra.mxu0 %v2332_v4  ;;  %2053 = vmatprep.subr.bf16.mxu1 %v2346_v15  ;;  %v2347_v19 = vld [vmem:[#allocation7 + $0x80] sm:$0xff]   ;;  %v2342_v22 = vld [vmem:[#allocation7 + $0x30] sm:$0xff]   ;;  %v2343_v26 = vld [vmem:[#allocation7 + $0x78] sm:$0xff]   ;;  %s2528_s29 = scalar_lea.vmem %s2941_s11, 128  ;;  %s2642_s20 = smov [#allocation10]  }
  0x95   : > { %2035 = vmatprep.subr.bf16.mxu0 %v2333_v5  ;;  %v265_v20 = vrot.slane %v263_v17, 1  ;;  %2054 = vmatpush3.bf16.msra.mxu1 %v2347_v19  ;;  %v317_v25 = vrot.slane %v266_v18, 7  ;;  %v2344_v30 = vld [vmem:[#allocation7 + $0x38] sm:$0xff]   ;;  %v2348_v37 = vld [vmem:[#allocation7 + $0x100] sm:$0xff]   ;;  %v2350_v41 = vld [vmem:[#allocation7 + $0x88] sm:$0xff]   ;;  %p2529_p10 = scmp.ne.s32.totalorder %s2941_s11, %s2528_s29  ;;  %s2532_s28 = sshll.u32 %s2642_s20, 4  ;;  %s2533_s28 = int_to_ptr.vmem [resolvable:$false] %s2532_s28 }
  0x96   : > { %2055 = vmatprep.subr.bf16.mxu1 %v2349_v21  ;;  %v2351_v42 = vld [vmem:[#allocation7 + $0x108] sm:$0xff]   ;;  %v2352_v43 = vld [vmem:[#allocation7 + $0xd0] sm:$0xff]   ;;  %v2355_v46 = vld [vmem:[#allocation7 + $0xd8] sm:$0xff]   ;;  %s2534_s30 = scalar_lea.vmem %s2533_s28, 256  ;;  %p2535_p13 = scmp.lt.s32.totalorder %s2941_s11, %s2533_s28 }
  0x97   : > { %v268_v23 = vor.u32 %v266_v18, %v265_v20  ;;  %v323_v24 = vshrl.u32 %v265_v20, 16  ;;  %v320_v34 = vor.u32 %v317_v25, %v263_v17  ;;  %v2353_v44 = vld [vmem:[#allocation7 + $0x90] sm:$0xff]   ;;  %v2356_v47 = vld [vmem:[#allocation7 + $0x98] sm:$0xff]   ;;  %v477_v48 = vld [vmem:[#allocation3 + $0x8] sm:$0xff]  ;;  %p2530_p6 = pnand %p2529_p10, %p2810_p8  ;;  %p2536_p3 = scmp.lt.s32.totalorder %s2534_s30, %s2528_s29 }
  0x98   : > { %2036 = vmatpush3.bf16.msra.mxu0 %v2334_v6  ;;  %v2354_v45 = vld [vmem:[#allocation7 + $0x110] sm:$0xff]   ;;  %v2357_v49 = vld [vmem:[#allocation7 + $0x118] sm:$0xff]   ;;  %v2358_v50 = vld [vmem:[#allocation7 + $0xe0] sm:$0xff]  }
  0x99   : > { %2037 = vmatprep.subr.bf16.mxu0 %v2335_v7  ;;  %v325_v27 = vrot.slane %v323_v24, 7  ;;  %v327_v28 = vshrl.u32 %v268_v23, 16  ;;  %v330_v29 = vshll.u32 %v268_v23, 16  ;;  %2056 = vmatpush3.bf16.msra.mxu1 %v2350_v41  ;;  %v2359_v51 = vld [vmem:[#allocation7 + $0xa0] sm:$0xff]   ;;  %v2361_v53 = vld [vmem:[#allocation7 + $0xe8] sm:$0xff]   ;;  %v2364_v56 = vld [vmem:[#allocation7 + $0xf0] sm:$0xff]   ;;  %p2531_p11 = pneg %p2530_p6  ;;  %p2537_p7 = por %p2536_p3, %p2535_p13 }
  0x9a   : > { %v260_v31 = vld [vmem:[#allocation2] sm:$0x80]  ;;  %2057 = vmatprep.subr.bf16.mxu1 %v2352_v43  ;;  %v2360_v52 = vld [vmem:[#allocation7 + $0x120] sm:$0xff]   ;;  %v2362_v54 = vld [vmem:[#allocation7 + $0xa8] sm:$0xff]  }
  0x9b   : > { %v329_v32 = vrot.slane %v327_v28, 7  ;;  %v311_v33 = vshrl.u32 %v260_v31, 16  ;;  %478 = vst [vmem:[#allocation2] sm:$0xff] %v477_v48  ;;  %v2363_v55 = vld [vmem:[#allocation7 + $0x128] sm:$0xff]   ;;  %v2365_v57 = vld [vmem:[#allocation7 + $0xb0] sm:$0xff]   ;;  %v2367_v58 = vld [vmem:[#allocation7 + $0xf8] sm:$0xff]   ;;  %p2538_p12 = pnand %p2537_p7, %p2531_p11 }
  0x9c   : > { %2038 = vmatpush3.bf16.msra.mxu0 %v2336_v8  ;;  %v2366_v59 = vld [vmem:[#allocation7 + $0x130] sm:$0xff]   ;;  %v2368_v60 = vld [vmem:[#allocation7 + $0xb8] sm:$0xff]   ;;  %v2370_v0 = vld [vmem:[#allocation7 + $0x1c0] sm:$0xff]  }
  0x9d   : > { %2039 = vmatprep.subr.bf16.mxu0 %v2337_v9  ;;  %v332_v35 = vor.u32 %v330_v29, %v329_v32  ;;  %v313_v36 = vrot.slane %v311_v33, 7  ;;  %2058 = vmatpush3.bf16.msra.mxu1 %v2353_v44  ;;  %v2369_v61 = vld [vmem:[#allocation7 + $0x138] sm:$0xff]   ;;  %v816_v63 = vld [vmem:[#allocation3 + $0x10] sm:$0xff]  ;;  %v1892_v2 = vld [vmem:[#allocation9] ss:$0 sm:$0xff] }
  0x9e   : > { %2059 = vmatprep.subr.bf16.mxu1 %v2355_v46  ;;  %v2372_v29 = vld [vmem:[#allocation7 + $0x1c8] sm:$0xff]   ;;  %v2374_v32 = vld [vmem:[#allocation7 + $0x1d0] sm:$0xff]   ;;  %v2378_v41 = vld [vmem:[#allocation7 + $0x1e0] sm:$0xff]  }
  0x9f   : > { %v333_v38 = vsel %vm309_vm0, %v325_v27, %v332_v35  ;;  %v321_v39 = vsel %vm309_vm0, %v313_v36, %v320_v34  ;;  %v2371_v27 = vld [vmem:[#allocation7 + $0x180] sm:$0xff]   ;;  %v2373_v31 = vld [vmem:[#allocation7 + $0x188] sm:$0xff]   ;;  %v2375_v34 = vld [vmem:[#allocation7 + $0x190] sm:$0xff]  }
  0xa0   : > { %2040 = vmatpush3.bf16.msra.mxu0 %v2338_v10  ;;  %464 = vmatprep.mubr.bf16.mxu0 %v333_v38  ;;  %v2376_v38 = vld [vmem:[#allocation7 + $0x1d8] sm:$0xff]   ;;  %v2380_v43 = vld [vmem:[#allocation7 + $0x1e8] sm:$0xff]   ;;  %v2383_v46 = vld [vmem:[#allocation7 + $0x1b0] sm:$0xff]  }
  0xa1   : > { %2041 = vmatprep.subr.bf16.mxu0 %v2339_v11  ;;  %2060 = vmatpush3.bf16.msra.mxu1 %v2356_v47  ;;  %v2381_v44 = vld [vmem:[#allocation7 + $0x1a8] sm:$0xff]   ;;  %v2384_v47 = vld [vmem:[#allocation7 + $0x1f8] sm:$0xff]  }
  0xa2   : > { %2061 = vmatprep.subr.bf16.mxu1 %v2358_v50  ;;  %v480_v62 = vld [vmem:[#allocation2] sm:$0x80]  ;;  %v2385_v48 = vld [vmem:[#allocation7 + $0x1b8] sm:$0xff]  }
  0xa3   : > { %817 = vst [vmem:[#allocation2] sm:$0xff] %v816_v63  ;;  %v532_v18 = vshrl.u32 %v480_v62, 16  ;;  %v1017_v50 = vld [vmem:[#allocation3 + $0x18] sm:$0xff] }
  0xa4   : > { %2042 = vmatpush3.bf16.msra.mxu0 %v2340_v13 }
  0xa5   : > { %2043 = vmatprep.subr.bf16.mxu0 %v2341_v16  ;;  %2062 = vmatpush3.bf16.msra.mxu1 %v2359_v51  ;;  %v534_v23 = vrot.slane %v532_v18, 7  ;;  %v2386_v51 = vld [vmem:[#allocation7 + $0x240] sm:$0xff]   ;;  %v2393_v18 = vld [vmem:[#allocation7 + $0x218] sm:$0xff]  }
  0xa6   : > { %2063 = vmatprep.subr.bf16.mxu1 %v2361_v53  ;;  %v2388_v53 = vld [vmem:[#allocation7 + $0x248] sm:$0xff]  }
  0xa8   : > { %2044 = vmatpush3.bf16.msra.mxu0 %v2342_v22 }
  0xa9   : > { %2045 = vmatprep.subr.bf16.mxu0 %v2343_v26  ;;  %2064 = vmatpush3.bf16.msra.mxu1 %v2362_v54  ;;  %v2389_v54 = vld [vmem:[#allocation7 + $0x208] sm:$0xff]  }
  0xaa   : > { %2065 = vmatprep.subr.bf16.mxu1 %v2364_v56 }
  0xac   : > { %2046 = vmatpush3.bf16.msra.mxu0 %v2344_v30 }
  0xad   : > { %2181 = vmatprep.subr.bf16.mxu0 %v2640_v40  ;;  %2066 = vmatpush3.bf16.msra.mxu1 %v2365_v57  ;;  %v1909_v57 = vld [vmem:[#allocation9 + $0x1] ss:$0 sm:$0xff] }
  0xae   : > { %2067 = vmatprep.subr.bf16.mxu1 %v2367_v58 }
  0xaf   : > { %465 = vmatmul.mubr.bf16.vlgmr.msra.gmra.mrb[0].mxu0 %v321_v39  ;;  %v2377_v39 = vld [vmem:[#allocation7 + $0x198] sm:$0xff]  }
  0xb0   : > { %2182 = vmatpush3.bf16.msra.mxu0 %v2348_v37  ;;  %2197 = vmatprep.mubr.msk.bf16.mxu0 %vm2641_vm1, %v2640_v40 }
  0xb1   : > { %2183 = vmatprep.subr.bf16.mxu0 %v2640_v40  ;;  %2068 = vmatpush3.bf16.msra.mxu1 %v2368_v60 }
  0xb2   : > { %2084 = vmatprep.subr.bf16.mxu1 %v2370_v0 }
  0xb4   : > { %2184 = vmatpush3.bf16.msra.mxu0 %v2351_v42  ;;  %v2379_v42 = vld [vmem:[#allocation7 + $0x1a0] sm:$0xff]  }
  0xb5   : > { %2185 = vmatprep.subr.bf16.mxu0 %v2640_v40 }
  0xb8   : > { %2186 = vmatpush3.bf16.msra.mxu0 %v2354_v45  ;;  %v2382_v45 = vld [vmem:[#allocation7 + $0x1f0] sm:$0xff]  }
  0xb9   : > { %2187 = vmatprep.subr.bf16.mxu0 %v2640_v40 }
  0xbc   : > { %2188 = vmatpush3.bf16.msra.mxu0 %v2357_v49  ;;  %v819_v49 = vld [vmem:[#allocation2] sm:$0x80] }
  0xbd   : > { %2189 = vmatprep.subr.bf16.mxu0 %v2640_v40  ;;  %1018 = vst [vmem:[#allocation2] sm:$0xff] %v1017_v50  ;;  %v2407_v50 = vld [vmem:[#allocation7 + $0x290] sm:$0xff]  }
  0xc0   : > { %2190 = vmatpush3.bf16.msra.mxu0 %v2360_v52  ;;  %v2387_v52 = vld [vmem:[#allocation7 + $0x200] sm:$0xff]  }
  0xc1   : > { %2191 = vmatprep.subr.bf16.mxu0 %v2640_v40 }
  0xc4   : > { %2192 = vmatpush3.bf16.msra.mxu0 %v2363_v55  ;;  %v2390_v55 = vld [vmem:[#allocation7 + $0x250] sm:$0xff]  }
  0xc5   : > { %2193 = vmatprep.subr.bf16.mxu0 %v2640_v40 }
  0xc8   : > { %2194 = vmatpush3.bf16.msra.mxu0 %v2366_v59  ;;  %v1926_v59 = vld [vmem:[#allocation9 + $0x2] ss:$0 sm:$0xff] }
  0xc9   : > { %2195 = vmatprep.subr.bf16.mxu0 %v2640_v40 }
  0xcc   : > { %2196 = vmatpush3.bf16.msra.mxu0 %v2369_v61 }
  0xcd   : > { %2106 = vmatprep.subr.bf16.mxu0 %v2386_v51  ;;  %v2408_v51 = vld [vmem:[#allocation7 + $0x2d8] sm:$0xff]  }
  0xcf   : > { %2198 = vmatmul.mubr.bf16.vlgmr.msra.gmra.mrb[4].mxu0 %v2892_v12 }
  0xd0   : > { %2107 = vmatpush3.bf16.msra.mxu0 %v2387_v52  ;;  %v2409_v52 = vld [vmem:[#allocation7 + $0x298] sm:$0xff]  }
  0xd1   : > { %2108 = vmatprep.subr.bf16.mxu0 %v2388_v53  ;;  %v2410_v53 = vld [vmem:[#allocation7 + $0x2e0] sm:$0xff]  }
  0xd4   : > { %2109 = vmatpush3.bf16.msra.mxu0 %v2389_v54  ;;  %v2411_v54 = vld [vmem:[#allocation7 + $0x2a0] sm:$0xff]  }
  0xd5   : > { %2110 = vmatprep.subr.bf16.mxu0 %v2390_v55  ;;  %v2412_v55 = vld [vmem:[#allocation7 + $0x2e8] sm:$0xff]  }
 0x182   : > { %v2047_v1 = vpop.f32.mrb[0].mxu0 }
 0x183   : > { %v2048_v3 = vpop.f32.mrb[1].mxu0 }
 0x184   : > { %v2049_v4 = vadd.f32 %v2048_v3, %v2047_v1  ;;  %v2050_v5 = vpop.f32.mrb[2].mxu0 }
 0x185   : > { %v2051_v6 = vpop.f32.mrb[3].mxu0 }
 0x186   : > { %v467_v7 = vadd.f32 %v2049_v4, %v1892_v2  ;;  %v2052_v8 = vadd.f32 %v2051_v6, %v2050_v5 }
 0x188   : > { %v470_v9 = vadd.f32 %v2052_v8, %v1892_v2  ;;  %v473_v10 = vmax.f32 %v467_v7, 0.0 }
 0x18a   : > { %v474_v11 = vmax.f32 %v470_v9, 0.0 }
 0x18c   : > { %v475_v13 = vpack.c.bf16 %v474_v11, %v473_v10  ;;  %v869_v11 = vrot.slane %v819_v49, 7  ;;  %v2406_v49 = vld [vmem:[#allocation7 + $0x2d0] sm:$0xff]  }
 0x18e   : > { %v483_v14 = vshll.u32 %v475_v13, 16  ;;  %489 = vst [vmem:[#allocation3 + $0x8] sm:$0xff] %v475_v13  ;;  %v486_v15 = vshrl.u32 %v475_v13, 16 }
 0x190   : > { %v485_v16 = vrot.slane %v483_v14, 1  ;;  %v538_v12 = vrot.slane %v486_v15, 7 }
 0x192   : > { %v488_v17 = vor.u32 %v486_v15, %v485_v16  ;;  %v544_v19 = vshrl.u32 %v485_v16, 16  ;;  %v541_v24 = vor.u32 %v538_v12, %v483_v14  ;;  %v2391_v16 = vld [vmem:[#allocation7 + $0x210] sm:$0xff]   ;;  %v2394_v12 = vld [vmem:[#allocation7 + $0x260] sm:$0xff]  }
 0x193   : > { %2111 = vmatpush3.bf16.msra.mxu0 %v2391_v16 }
 0x194   : > { %v548_v20 = vshrl.u32 %v488_v17, 16  ;;  %v551_v22 = vshll.u32 %v488_v17, 16  ;;  %v546_v25 = vrot.slane %v544_v19, 7  ;;  %v542_v30 = vsel %vm309_vm0, %v534_v23, %v541_v24  ;;  %v2392_v17 = vld [vmem:[#allocation7 + $0x258] sm:$0xff]   ;;  %v2395_v19 = vld [vmem:[#allocation7 + $0x220] sm:$0xff]   ;;  %v2399_v23 = vld [vmem:[#allocation7 + $0x230] sm:$0xff]  }
 0x195   : > { %2112 = vmatprep.subr.bf16.mxu0 %v2392_v17  ;;  %v2400_v24 = vld [vmem:[#allocation7 + $0x278] sm:$0xff]  }
 0x196   : > { %v550_v21 = vrot.slane %v548_v20, 7  ;;  %v2396_v20 = vld [vmem:[#allocation7 + $0x268] sm:$0xff]  }
 0x197   : > { %2113 = vmatpush3.bf16.msra.mxu0 %v2393_v18 }
 0x198   : > { %v553_v26 = vor.u32 %v551_v22, %v550_v21  ;;  %2114 = vmatprep.subr.bf16.mxu0 %v2394_v12  ;;  %v2397_v21 = vld [vmem:[#allocation7 + $0x228] sm:$0xff]   ;;  %v2398_v22 = vld [vmem:[#allocation7 + $0x270] sm:$0xff]  }
 0x19a   : > { %v554_v28 = vsel %vm309_vm0, %v546_v25, %v553_v26  ;;  %v2401_v25 = vld [vmem:[#allocation7 + $0x238] sm:$0xff]   ;;  %v1020_v26 = vld [vmem:[#allocation2] sm:$0x80] }
 0x19b   : > { %685 = vmatprep.mubr.bf16.mxu1 %v554_v28  ;;  %2115 = vmatpush3.bf16.msra.mxu0 %v2395_v19  ;;  %v2402_v28 = vld [vmem:[#allocation7 + $0x2c0] sm:$0xff]  }
 0x19c   : > { %686 = vmatmul.mubr.bf16.vlgmr.msra.gmra.mrb[0].mxu1 %v542_v30  ;;  %2116 = vmatprep.subr.bf16.mxu0 %v2396_v20  ;;  %v2404_v30 = vld [vmem:[#allocation7 + $0x2c8] sm:$0xff]  }
 0x19d   : > { %2085 = vmatpush3.bf16.msra.mxu1 %v2371_v27  ;;  %v1223_v27 = vld [vmem:[#allocation3 + $0x20] sm:$0xff] }
 0x19e   : > { %2086 = vmatprep.subr.bf16.mxu1 %v2372_v29  ;;  %v2403_v29 = vld [vmem:[#allocation7 + $0x280] sm:$0xff]   ;;  %1224 = vst [vmem:[#allocation2] sm:$0xff] %v1223_v27 }
 0x19f   : > { %2117 = vmatpush3.bf16.msra.mxu0 %v2397_v21 }
 0x1a0   : > { %2118 = vmatprep.subr.bf16.mxu0 %v2398_v22 }
 0x1a1   : > { %2087 = vmatpush3.bf16.msra.mxu1 %v2373_v31  ;;  %v2405_v31 = vld [vmem:[#allocation7 + $0x288] sm:$0xff]  }
 0x1a2   : > { %v803_v33 = vpop.f32.mrb[4].mxu0  ;;  %2088 = vmatprep.subr.bf16.mxu1 %v2374_v32 }
 0x1a3   : > { %v2199_v35 = vpop.f32.mrb[5].mxu0  ;;  %v804_v0 = vadd.f32 %v1926_v59, %v803_v33  ;;  %2119 = vmatpush3.bf16.msra.mxu0 %v2399_v23  ;;  %v1935_v33 = vld [vmem:[#allocation9 + $0x3] ss:$0 sm:$0xff] }
 0x1a4   : > { %v806_v36 = vpop.f32.mrb[6].mxu0  ;;  %2120 = vmatprep.subr.bf16.mxu0 %v2400_v24 }
 0x1a5   : > { %2089 = vmatpush3.bf16.msra.mxu1 %v2375_v34  ;;  %v2200_v37 = vpop.f32.mrb[7].mxu0  ;;  %v807_v6 = vadd.f32 %v1926_v59, %v806_v36  ;;  %v2416_v59 = vld [vmem:[#allocation7 + $0x2f8] sm:$0xff]  }
 0x1a6   : > { %2090 = vmatprep.subr.bf16.mxu1 %v2376_v38 }
 0x1a7   : > { %2121 = vmatpush3.bf16.msra.mxu0 %v2401_v25 }
 0x1a9   : > { %2091 = vmatpush3.bf16.msra.mxu1 %v2377_v39 }
 0x1aa   : > { %2092 = vmatprep.subr.bf16.mxu1 %v2378_v41 }
 0x1ad   : > { %2093 = vmatpush3.bf16.msra.mxu1 %v2379_v42 }
 0x1ae   : > { %2094 = vmatprep.subr.bf16.mxu1 %v2380_v43 }
 0x1b1   : > { %2095 = vmatpush3.bf16.msra.mxu1 %v2381_v44 }
 0x1b2   : > { %2096 = vmatprep.subr.bf16.mxu1 %v2382_v45  ;;  %v1069_v45 = vrot.slane %v1020_v26, 7  ;;  %v2418_v26 = vld [vmem:[#allocation7 + $0x380] sm:$0xff]  }
 0x1b5   : > { %2097 = vmatpush3.bf16.msra.mxu1 %v2383_v46 }
 0x1b6   : > { %2098 = vmatprep.subr.bf16.mxu1 %v2384_v47 }
 0x1b9   : > { %2099 = vmatpush3.bf16.msra.mxu1 %v2385_v48 }
 0x1ba   : > { %2128 = vmatprep.subr.bf16.mxu1 %v2402_v28  ;;  %v2419_v28 = vld [vmem:[#allocation7 + $0x388] sm:$0xff]  }
 0x26f   : > { %v2069_v56 = vpop.f32.mrb[0].mxu1 }
 0x270   : > { %v2070_v58 = vpop.f32.mrb[1].mxu1 }
 0x271   : > { %v2071_v60 = vadd.f32 %v2070_v58, %v2069_v56  ;;  %v2072_v61 = vpop.f32.mrb[2].mxu1  ;;  %v2413_v56 = vld [vmem:[#allocation7 + $0x2a8] sm:$0xff]   ;;  %v2415_v58 = vld [vmem:[#allocation7 + $0x2b0] sm:$0xff]  }
 0x272   : > { %v2073_v62 = vpop.f32.mrb[3].mxu1 }
 0x273   : > { %v688_v63 = vadd.f32 %v2071_v60, %v1909_v57  ;;  %v2074_v1 = vadd.f32 %v2073_v62, %v2072_v61  ;;  %v2417_v60 = vld [vmem:[#allocation7 + $0x2b8] sm:$0xff]   ;;  %v1226_v61 = vld [vmem:[#allocation2] sm:$0xc0]  ;;  %v1424_v62 = vld [vmem:[#allocation3 + $0x28] sm:$0xff] }
 0x274   : > { %1425 = vst [vmem:[#allocation2] sm:$0xff] %v1424_v62  ;;  %v1276_v23 = vrot.slane %v1226_v61, 6 }
 0x275   : > { %v694_v2 = vmax.f32 %v688_v63, 0.0  ;;  %v691_v3 = vadd.f32 %v2074_v1, %v1909_v57  ;;  %v2414_v57 = vld [vmem:[#allocation7 + $0x2f0] sm:$0xff]   ;;  %v2426_v63 = vld [vmem:[#allocation7 + $0x340] sm:$0xff]   ;;  %v2428_v1 = vld [vmem:[#allocation7 + $0x348] sm:$0xff]  }
 0x276   : > { %2150 = vmatprep.subr.bf16.mxu0 %v2426_v63 }
 0x277   : > { %v810_v4 = vadd.f32 %v804_v0, %v694_v2  ;;  %v695_v5 = vmax.f32 %v691_v3, 0.0  ;;  %v2427_v0 = vld [vmem:[#allocation7 + $0x300] sm:$0xff]   ;;  %v2429_v2 = vld [vmem:[#allocation7 + $0x308] sm:$0xff]   ;;  %v2430_v3 = vld [vmem:[#allocation7 + $0x350] sm:$0xff]  }
 0x279   : > { %v811_v7 = vadd.f32 %v807_v6, %v695_v5  ;;  %v812_v8 = vmax.f32 %v810_v4, 0.0  ;;  %v1953_v5 = vld [vmem:[#allocation9 + $0x4] ss:$0 sm:$0xff] }
 0x27b   : > { %v813_v9 = vmax.f32 %v811_v7, 0.0 }
 0x27d   : > { %v2912_v10 = vpack.c.bf16 %v813_v9, %v812_v8 }
 0x27f   : > { %818 = vst [vmem:[#allocation2 + $0x8] sm:$0xff] %v2912_v10  ;;  %1004 = vmatprep.mubr.bf16.mxu1 %v2912_v10  ;;  %824 = vst [vmem:[#allocation3 + $0x10] sm:$0xff] %v2912_v10  ;;  %v1216_v12 = vunpack.c.h.bf16 %v2912_v10 }
 0x286   : > { %v820_v13 = vld [vmem:[#allocation2 + $0x8] sm:$0x7f] }
 0x287   : > { %v870_v14 = vrot.slane %v820_v13, 7 }
 0x289   : > { %v871_v15 = vsel %vm868_vm2, %v869_v11, %v870_v14 }
 0x28a   : > { %1005 = vmatmul.mubr.bf16.vlgmr.msra.gmra.mrb[4].mxu1 %v871_v15  ;;  %v1215_v15 = vunpack.c.l.bf16 %v2912_v10  ;;  %v2420_v10 = vld [vmem:[#allocation7 + $0x390] sm:$0xff]  }
 0x28b   : > { %2129 = vmatpush3.bf16.msra.mxu1 %v2403_v29  ;;  %v2421_v29 = vld [vmem:[#allocation7 + $0x398] sm:$0xff]  }
 0x28c   : > { %2130 = vmatprep.subr.bf16.mxu1 %v2404_v30  ;;  %v2422_v30 = vld [vmem:[#allocation7 + $0x3a0] sm:$0xff]  }
 0x28f   : > { %2131 = vmatpush3.bf16.msra.mxu1 %v2405_v31  ;;  %v2423_v31 = vld [vmem:[#allocation7 + $0x3a8] sm:$0xff]  }
 0x290   : > { %2132 = vmatprep.subr.bf16.mxu1 %v2406_v49 }
 0x293   : > { %2133 = vmatpush3.bf16.msra.mxu1 %v2407_v50 }
 0x294   : > { %2134 = vmatprep.subr.bf16.mxu1 %v2408_v51 }
 0x297   : > { %2135 = vmatpush3.bf16.msra.mxu1 %v2409_v52 }
 0x298   : > { %2136 = vmatprep.subr.bf16.mxu1 %v2410_v53 }
 0x29b   : > { %2137 = vmatpush3.bf16.msra.mxu1 %v2411_v54 }
 0x29c   : > { %2138 = vmatprep.subr.bf16.mxu1 %v2412_v55 }
 0x29f   : > { %2139 = vmatpush3.bf16.msra.mxu1 %v2413_v56 }
 0x2a0   : > { %2140 = vmatprep.subr.bf16.mxu1 %v2414_v57  ;;  %v1427_v57 = vld [vmem:[#allocation2] sm:$0xc0] }
 0x2a3   : > { %2141 = vmatpush3.bf16.msra.mxu1 %v2415_v58  ;;  %v1476_v58 = vrot.slane %v1427_v57, 6 }
 0x2a4   : > { %2142 = vmatprep.subr.bf16.mxu1 %v2416_v59 }
 0x2a7   : > { %2143 = vmatpush3.bf16.msra.mxu1 %v2417_v60 }
 0x2a8   : > { %2201 = vmatprep.subr.bf16.mxu1 %v2640_v40 }
 0x35d   : > { %v2100_v32 = vpop.f32.mrb[4].mxu1 }
 0x35e   : > { %v2101_v34 = vpop.f32.mrb[5].mxu1 }
 0x35f   : > { %v2102_v35 = vadd.f32 %v2101_v34, %v2100_v32  ;;  %v2103_v36 = vpop.f32.mrb[6].mxu1  ;;  %v2424_v32 = vld [vmem:[#allocation7 + $0x3b0] sm:$0xff]  }
 0x360   : > { %v2104_v37 = vpop.f32.mrb[7].mxu1  ;;  %v2431_v34 = vld [vmem:[#allocation7 + $0x310] sm:$0xff]  }
 0x361   : > { %v1007_v38 = vadd.f32 %v2102_v35, %v1935_v33  ;;  %v2105_v39 = vadd.f32 %v2104_v37, %v2103_v36  ;;  %v2432_v35 = vld [vmem:[#allocation7 + $0x358] sm:$0xff]   ;;  %v2434_v37 = vld [vmem:[#allocation7 + $0x360] sm:$0xff]  }
 0x362   : > { %v2433_v36 = vld [vmem:[#allocation7 + $0x318] sm:$0xff]  }
 0x363   : > { %v1010_v41 = vadd.f32 %v2105_v39, %v1935_v33  ;;  %v1013_v42 = vmax.f32 %v1007_v38, 0.0  ;;  %v2425_v33 = vld [vmem:[#allocation7 + $0x3b8] sm:$0xff]   ;;  %v2435_v38 = vld [vmem:[#allocation7 + $0x320] sm:$0xff]   ;;  %v2436_v39 = vld [vmem:[#allocation7 + $0x368] sm:$0xff]  }
 0x365   : > { %v1014_v43 = vmax.f32 %v1010_v41, 0.0  ;;  %v2437_v41 = vld [vmem:[#allocation7 + $0x328] sm:$0xff]  }
 0x367   : > { %v1015_v44 = vpack.c.bf16 %v1014_v43, %v1013_v42  ;;  %v2438_v42 = vld [vmem:[#allocation7 + $0x370] sm:$0xff]  }
 0x368   : > { %v2439_v43 = vld [vmem:[#allocation7 + $0x330] sm:$0xff]  }
 0x369   : > { %1019 = vst [vmem:[#allocation2 + $0x8] sm:$0xff] %v1015_v44  ;;  %1204 = vmatprep.mubr.bf16.mxu0 %v1015_v44  ;;  %1025 = vst [vmem:[#allocation3 + $0x18] sm:$0xff] %v1015_v44  ;;  %v2441_v44 = vld [vmem:[#allocation7 + $0x338] sm:$0xff]  }
 0x370   : > { %v1021_v46 = vld [vmem:[#allocation2 + $0x8] sm:$0x7f] }
 0x371   : > { %v1070_v47 = vrot.slane %v1021_v46, 7  ;;  %v1971_v46 = vld [vmem:[#allocation9 + $0x5] ss:$0 sm:$0xff] }
 0x373   : > { %v1071_v48 = vsel %vm868_vm2, %v1069_v45, %v1070_v47 }
 0x374   : > { %1205 = vmatmul.mubr.bf16.vlgmr.msra.gmra.mrb[8].mxu0 %v1071_v48 }
 0x375   : > { %2151 = vmatpush3.bf16.msra.mxu0 %v2427_v0 }
 0x376   : > { %2152 = vmatprep.subr.bf16.mxu0 %v2428_v1 }
 0x379   : > { %2153 = vmatpush3.bf16.msra.mxu0 %v2429_v2 }
 0x37a   : > { %2154 = vmatprep.subr.bf16.mxu0 %v2430_v3  ;;  %v1989_v3 = vld [vmem:[#allocation9 + $0x6] ss:$0 sm:$0xff] }
 0x37d   : > { %2155 = vmatpush3.bf16.msra.mxu0 %v2431_v34 }
 0x37e   : > { %2156 = vmatprep.subr.bf16.mxu0 %v2432_v35 }
 0x381   : > { %2157 = vmatpush3.bf16.msra.mxu0 %v2433_v36 }
 0x382   : > { %2158 = vmatprep.subr.bf16.mxu0 %v2434_v37 }
 0x385   : > { %2159 = vmatpush3.bf16.msra.mxu0 %v2435_v38 }
 0x386   : > { %2160 = vmatprep.subr.bf16.mxu0 %v2436_v39 }
 0x389   : > { %2161 = vmatpush3.bf16.msra.mxu0 %v2437_v41 }
 0x38a   : > { %2162 = vmatprep.subr.bf16.mxu0 %v2438_v42 }
 0x38d   : > { %2163 = vmatpush3.bf16.msra.mxu0 %v2439_v43 }
 0x447   : > { %v2122_v4 = vpop.f32.mrb[8].mxu0 }
 0x448   : > { %v2123_v6 = vpop.f32.mrb[9].mxu0 }
 0x449   : > { %v2124_v7 = vadd.f32 %v2123_v6, %v2122_v4  ;;  %v2125_v8 = vpop.f32.mrb[10].mxu0 }
 0x44a   : > { %v2126_v9 = vpop.f32.mrb[11].mxu0 }
 0x44b   : > { %v1207_v11 = vadd.f32 %v2124_v7, %v1953_v5  ;;  %v2127_v13 = vadd.f32 %v2126_v9, %v2125_v8  ;;  %v2007_v7 = vld [vmem:[#allocation9 + $0x7] ss:$0 sm:$0xff] }
 0x44d   : > { %v1213_v14 = vmax.f32 %v1207_v11, 0.0  ;;  %v1210_v16 = vadd.f32 %v2127_v13, %v1953_v5 }
 0x44f   : > { %v1217_v17 = vadd.f32 %v1215_v15, %v1213_v14  ;;  %v1214_v18 = vmax.f32 %v1210_v16, 0.0 }
 0x451   : > { %v1218_v19 = vadd.f32 %v1216_v12, %v1214_v18  ;;  %v1219_v20 = vmax.f32 %v1217_v17, 0.0 }
 0x453   : > { %v1220_v21 = vmax.f32 %v1218_v19, 0.0 }
 0x455   : > { %v1221_v22 = vpack.c.bf16 %v1220_v21, %v1219_v20 }
 0x457   : > { %1225 = vst [vmem:[#allocation2 + $0x8] sm:$0xff] %v1221_v22  ;;  %1411 = vmatprep.mubr.bf16.mxu1 %v1221_v22  ;;  %1231 = vst [vmem:[#allocation3 + $0x20] sm:$0xff] %v1221_v22 }
 0x45e   : > { %v1227_v24 = vld [vmem:[#allocation2 + $0x8] sm:$0x3f] }
 0x45f   : > { %v1277_v25 = vrot.slane %v1227_v24, 6 }
 0x461   : > { %v1278_v27 = vsel %vm1275_vm3, %v1276_v23, %v1277_v25 }
 0x462   : > { %1412 = vmatmul.mubr.bf16.vlgmr.msra.gmra.mrb[8].mxu1 %v1278_v27 }
 0x463   : > { %2202 = vmatpush3.bf16.msra.mxu1 %v2418_v26  ;;  %2217 = vmatprep.mubr.msk.bf16.mxu1 %vm2641_vm1, %v2640_v40 }
 0x464   : > { %2203 = vmatprep.subr.bf16.mxu1 %v2640_v40 }
 0x467   : > { %2204 = vmatpush3.bf16.msra.mxu1 %v2419_v28 }
 0x468   : > { %2205 = vmatprep.subr.bf16.mxu1 %v2640_v40 }
 0x46b   : > { %2206 = vmatpush3.bf16.msra.mxu1 %v2420_v10 }
 0x46c   : > { %2207 = vmatprep.subr.bf16.mxu1 %v2640_v40 }
 0x46f   : > { %2208 = vmatpush3.bf16.msra.mxu1 %v2421_v29 }
 0x470   : > { %2209 = vmatprep.subr.bf16.mxu1 %v2640_v40 }
 0x473   : > { %2210 = vmatpush3.bf16.msra.mxu1 %v2422_v30 }
 0x474   : > { %2211 = vmatprep.subr.bf16.mxu1 %v2640_v40 }
 0x477   : > { %2212 = vmatpush3.bf16.msra.mxu1 %v2423_v31 }
 0x478   : > { %2213 = vmatprep.subr.bf16.mxu1 %v2640_v40 }
 0x47b   : > { %2214 = vmatpush3.bf16.msra.mxu1 %v2424_v32 }
 0x47c   : > { %2215 = vmatprep.subr.bf16.mxu1 %v2640_v40  ;;  %v2440_v40 = vld [vmem:[#allocation7 + $0x378] sm:$0xff]  }
 0x47d   : > { %2164 = vmatprep.subr.bf16.mxu0 %v2440_v40 }
 0x47e   : > { %2165 = vmatpush3.bf16.msra.mxu0 %v2441_v44 }
 0x47f   : > { %2216 = vmatpush3.bf16.msra.mxu1 %v2425_v33 }
 0x482   : > { %2218 = vmatmul.mubr.bf16.vlgmr.msra.gmra.mrb[12].mxu1 %v1221_v22 }
 0x535   : > { %v2144_v45 = vpop.f32.mrb[8].mxu1 }
 0x536   : > { %v2145_v47 = vpop.f32.mrb[9].mxu1 }
 0x537   : > { %v2146_v48 = vadd.f32 %v2145_v47, %v2144_v45  ;;  %v2147_v49 = vpop.f32.mrb[10].mxu1 }
 0x538   : > { %v2148_v50 = vpop.f32.mrb[11].mxu1 }
 0x539   : > { %v1414_v51 = vadd.f32 %v2146_v48, %v1971_v46  ;;  %v2149_v52 = vadd.f32 %v2148_v50, %v2147_v49 }
 0x53b   : > { %v1417_v53 = vadd.f32 %v2149_v52, %v1971_v46  ;;  %v1420_v54 = vmax.f32 %v1414_v51, 0.0 }
 0x53d   : > { %v1421_v55 = vmax.f32 %v1417_v53, 0.0 }
 0x53f   : > { %v1422_v56 = vpack.c.bf16 %v1421_v55, %v1420_v54 }
 0x541   : > { %1426 = vst [vmem:[#allocation2 + $0x8] sm:$0xff] %v1422_v56  ;;  %1432 = vst [vmem:[#allocation3 + $0x28] sm:$0xff] %v1422_v56  ;;  %1611 = vmatprep.mubr.bf16.mxu0 %v1422_v56 }
 0x548   : > { %v1428_v59 = vld [vmem:[#allocation2 + $0x8] sm:$0x3f] }
 0x549   : > { %v1477_v60 = vrot.slane %v1428_v59, 6 }
 0x54b   : > { %v1478_v61 = vsel %vm1275_vm3, %v1476_v58, %v1477_v60 }
 0x54c   : > { %1612 = vmatmul.mubr.bf16.vlgmr.msra.gmra.mrb[12].mxu0 %v1478_v61 }
 0x555   : > { %v1729_v62 = vpop.f32.mrb[12].mxu1 }
 0x556   : > { %v2219_v63 = vpop.f32.mrb[13].mxu1  ;;  %v1730_v13 = vadd.f32 %v2007_v7, %v1729_v62 }
 0x557   : > { %v1732_v0 = vpop.f32.mrb[14].mxu1 }
 0x558   : > { %v2220_v1 = vpop.f32.mrb[15].mxu1  ;;  %v1733_v16 = vadd.f32 %v2007_v7, %v1732_v0 }
 0x61f   : > { %v2166_v2 = vpop.f32.mrb[12].mxu0 }
 0x620   : > { %v2167_v4 = vpop.f32.mrb[13].mxu0 }
 0x621   : > { %v2168_v5 = vadd.f32 %v2167_v4, %v2166_v2  ;;  %v2169_v6 = vpop.f32.mrb[14].mxu0 }
 0x622   : > { %v2170_v8 = vpop.f32.mrb[15].mxu0 }
 0x623   : > { %v1614_v9 = vadd.f32 %v2168_v5, %v1989_v3  ;;  %v2171_v11 = vadd.f32 %v2170_v8, %v2169_v6 }
 0x625   : > { %v1620_v14 = vmax.f32 %v1614_v9, 0.0  ;;  %v1617_v15 = vadd.f32 %v2171_v11, %v1989_v3 }
 0x627   : > { %v1736_v17 = vadd.f32 %v1730_v13, %v1620_v14  ;;  %v1621_v18 = vmax.f32 %v1617_v15, 0.0 }
 0x629   : > { %v1737_v12 = vadd.f32 %v1733_v16, %v1621_v18  ;;  %v1738_v19 = vmax.f32 %v1736_v17, 0.0 }
 0x62b   : > { %v1739_v20 = vmax.f32 %v1737_v12, 0.0 }
 0x62d   : > { %v2029_v21 = vpack.c.bf16 %v1739_v20, %v1738_v19 }
 0x62f   : > { %2030 = vst [vmem:[%s2888_s12] sm:$0xff] %v2029_v21  }
 0x630   : > { %2541 = shalt.err (!%p2538_p12)
}
 0x631   : > { %s2542_s5 = scalar_lea.hbm %s2939_s15, 128  ;;  %s2546_s2 = scalar_lea.hbm %s2999_s3, 1024 }
 0x632   : > { %p2543_p1 = scmp.ne.s32.totalorder %s2939_s15, %s2542_s5  ;;  %p2547_p9 = scmp.lt.u32.totalorder %s2939_s15, %s2999_s3 }
 0x633   : > { %p2548_p0 = scmp.lt.u32.totalorder %s2546_s2, %s2542_s5  ;;  %p2550_p10 = scmp.lt.u32.totalorder %s2542_s5, %s2939_s15 }
 0x634   : > { %p2544_p2 = pnand %p2543_p1, %p2810_p8 }
 0x635   : > { %p2549_p4 = por %p2548_p0, %p2547_p9 }
 0x636   : > { %p2545_p5 = pneg %p2544_p2 }
 0x637   : > { %p2551_p6 = por %p2550_p10, %p2549_p4 }
 0x639   : > { %p2552_p11 = pnand %p2551_p6, %p2545_p5 }
 0x63b   : > { %2555 = shalt.err (!%p2552_p11)
}
 0x63c   : > { %s2643_s12 = smov 64   ;;  %s2644_s22 = smov 4  }
 0x63d   : > { %2231 = dma.vmem_to_hbm [thread:$0]  (%p2810_p8), %s2941_s11, 128, %s2939_s15, %s1751_s16, %s2643_s12, %s2643_s12, %s2644_s22  }
 0x63e PF: > { %s3031_s24 = sld [smem:[#allocation14_spill]]  ;;  %s3032_s26 = sld [smem:[#allocation15_spill]] }
 0x63f   : > { %p2253_p13 = scmp.ge.s32.totalorder %s2630_s19, 2 }
 0x644   : > { %s1781_s23 = sand.u32 1, %s3031_s24   ;;  %p3033_p3 = scmp.ne.s32.totalorder %s3032_s26, 0 }
 0x645   : > { %s1782_s21 = scalar_lea.sflag [#allocation6], %s1781_s23 }
 0x646   : > { %p2245_p7 = pnand %p2253_p13, %p3033_p3 }
 0x648   : > { %2597 = dma.done.wait (!%p2245_p7), %s1782_s21, 128  }
 0x649   : > { %2599 = vsyncadd (!%p2245_p7), %s1782_s21, 4294967168  ;;  %s20_s19 = sadd.s32 1, %s2630_s19   ;;  %s3034_s4 = sld [smem:[#allocation16_spill]] }
 0x64a   : > { %p17_p12 = scmp.ge.s32.totalorder %s20_s19, 10   ;;  %s3035_s12 = smov %s2606_s13 }
 0x64b   : > { %s3036_s13 = smov %s2610_s14  ;;  %s3037_s14 = smov %s2823_s1 }
 0x64c   : > { %s3038_s15 = smov %s2622_s17  ;;  %s3039_s16 = smov %s2626_s18 }
 0x64d   : > { %s3041_s18 = smov %s3047_s9  ;;  %19 = sbr.rel (!%p17_p12) target bundleno = 11 (0xb), region = 108 }
 0x64f   : > { %s3040_s17 = smov %s3034_s4 }
 0x654   :  { %1787 = vsyncpa [#allocation5], 1 }
 0x655   :  { %1789 = vsyncpa [#allocation5 + $0x1], 1 }
 0x656   :  { %1790 = vsyncpa [#allocation8], 1 }
 0x657   :  { %1791 = vsyncpa [#allocation6], 1 }
 0x658   :  { %1793 = vsyncpa [#allocation6 + $0x1], 1 }

</bundles_post_ra>
